<compile_context>
chip_gen: v7x
topology: tpu7x:2x2x1
jax: 0.10.0
libtpu: 0.0.40
codegen_flags: <defaults>
</compile_context>

<pallas_src>
import functools

import jax
import jax.numpy as jnp
from jax.experimental import pallas as pl
from jax.experimental.pallas import tpu as pltpu


_MASK_VALUE = -1e30                 # large-negative (finite) masked score
_VMEM_LIMIT = 32 * 1024 * 1024      # explicit scoped-VMEM budget (safe on v5e/v6e/v7x)

# dot_general dimension numbers for `a @ b.T`: contract the LAST axis of both
# operands (weights stay in nn.Linear (out, in) layout; no transposes).
_DN_CONTRACT_LAST = (((1,), (1,)), ((), ()))


def _sublane_align(dtype):
    """Sublane alignment: 8 for 4-byte dtypes, 16 for 2-byte (bf16/f16)."""
    return 16 if jnp.dtype(dtype).itemsize == 2 else 8


def _round_up(x, m):
    return ((x + m - 1) // m) * m


def _maybe_pad_dim(d, align):
    """Padded extent for a tiled dim.  d <= align keeps the full-extent block
    (always a legal TPU tiling); otherwise d must be a multiple of align."""
    if d <= align or d % align == 0:
        return d
    return _round_up(d, align)


def _pick_tile(dim, preferred, align):
    """Largest aligned tile <= preferred dividing dim (or the full small dim).

    Raises instead of silently falling back to block == full dimension, which
    for large ragged dims would blow VMEM / kill pipelining (review item).
    """
    if dim <= preferred:
        return dim
    t = (preferred // align) * align
    while t >= align:
        if dim % t == 0:
            return t
        t -= align
    raise ValueError(
        f"no tile with alignment {align} and size <= {preferred} divides {dim}; "
        "pad the dimension in the wrapper")


# ----------------------------------------------------------------------------
# Tiled linear:  y = x @ w.T   with w in nn.Linear (out, in) layout
# ----------------------------------------------------------------------------
def _linear_kernel(x_ref, w_ref, o_ref, acc_ref):
    @pl.when(pl.program_id(2) == 0)
    def _init():
        acc_ref[...] = jnp.zeros_like(acc_ref)

    acc_ref[...] += jax.lax.dot_general(
        x_ref[...], w_ref[...], _DN_CONTRACT_LAST,
        preferred_element_type=jnp.float32)

    @pl.when(pl.program_id(2) == pl.num_programs(2) - 1)
    def _finalize():
        o_ref[...] = acc_ref[...].astype(o_ref.dtype)


def pallas_linear(x, w, *, tm=256, tn=256, tk=512):
    """x: (M, K), w: (N, K) -> (M, N).  Pads ragged dims internally."""
    M, K = x.shape
    N, Kw = w.shape
    assert K == Kw
    sub = _sublane_align(x.dtype)

    Mp = _maybe_pad_dim(M, sub)
    Kp = _maybe_pad_dim(K, 128)
    Np = _maybe_pad_dim(N, 128)
    if (Mp, Kp) != (M, K):
        x = jnp.pad(x, ((0, Mp - M), (0, Kp - K)))
    if (Np, Kp) != (N, K):
        w = jnp.pad(w, ((0, Np - N), (0, Kp - K)))

    tm = _pick_tile(Mp, tm, sub)
    tn = _pick_tile(Np, tn, 128)
    tk = _pick_tile(Kp, tk, 128)
    grid = (Mp // tm, Np // tn, Kp // tk)

    itemsize = jnp.dtype(x.dtype).itemsize
    cost = pl.CostEstimate(
        flops=2 * Mp * Np * Kp,
        transcendentals=0,
        bytes_accessed=(Mp * Kp + Np * Kp + Mp * Np) * itemsize)

    out = pl.pallas_call(
        _linear_kernel,
        out_shape=jax.ShapeDtypeStruct((Mp, Np), x.dtype),
        grid=grid,
        in_specs=[
            pl.BlockSpec((tm, tk), lambda i, j, k: (i, k)),
            pl.BlockSpec((tn, tk), lambda i, j, k: (j, k)),
        ],
        out_specs=pl.BlockSpec((tm, tn), lambda i, j, k: (i, j)),
        scratch_shapes=[pltpu.VMEM((tm, tn), jnp.float32)],
        compiler_params=pltpu.CompilerParams(
            dimension_semantics=("parallel", "parallel", "arbitrary"),
            vmem_limit_bytes=_VMEM_LIMIT),
        cost_estimate=cost,
    )(x, w)

    if (Mp, Np) != (M, N):
        out = out[:M, :N]
    return out


# ----------------------------------------------------------------------------
# Flash attention with heads folded onto the grid: q/k/v are (B*H, N, Dh)
# ----------------------------------------------------------------------------
def _flash_kernel(q_ref, k_ref, v_ref, o_ref, acc_ref, m_ref, l_ref, *,
                  block_kv, kv_len, masked):
    kv_i = pl.program_id(2)

    @pl.when(kv_i == 0)
    def _init():
        m_ref[...] = jnp.full_like(m_ref, -jnp.inf)
        l_ref[...] = jnp.zeros_like(l_ref)
        acc_ref[...] = jnp.zeros_like(acc_ref)

    q = q_ref[0]                       # (tq,  Dh)  -- scale already folded into W_q
    k = k_ref[0]                       # (tkv, Dh)
    v = v_ref[0]                       # (tkv, Dh)

    # s = q @ k.T via dot_general contracting last dims (no transpose).
    s = jax.lax.dot_general(q, k, _DN_CONTRACT_LAST,
                            preferred_element_type=jnp.float32)   # (tq, tkv)

    if masked:  # static flag: only emitted when the seq length was padded
        lane = jax.lax.broadcasted_iota(jnp.int32, s.shape, 1)
        s = jnp.where(kv_i * block_kv + lane < kv_len, s, _MASK_VALUE)

    # m/l are lane-replicated (tq, 128) -> every store is a full-width vst.
    m_prev = m_ref[...]                                             # (tq, 128)
    m_new = jnp.maximum(m_prev, jnp.max(s, axis=-1, keepdims=True))  # (tq, 128)
    alpha = jnp.exp(m_prev - m_new)                                  # (tq, 128)
    p = jnp.exp(s - m_new[:, :1])                                    # (tq, tkv)

    l_ref[...] = alpha * l_ref[...] + jnp.sum(p, axis=-1, keepdims=True)
    acc_ref[...] = alpha[:, :1] * acc_ref[...] + jnp.dot(
        p.astype(v.dtype), v, preferred_element_type=jnp.float32)   # (tq, Dh)
    m_ref[...] = m_new

    @pl.when(kv_i == pl.num_programs(2) - 1)
    def _finalize():
        # Exact reciprocal: runs once per Q block so the cost is negligible,
        # and it avoids the approx-EUP error flagged in review.
        inv_l = pl.reciprocal(l_ref[:, :1], approx=False)
        o_ref[0] = (acc_ref[...] * inv_l).astype(o_ref.dtype)


def pallas_flash_mha(q, k, v, *, tq=256, tkv=256):
    """q, k, v: (B*H, N, Dh); q pre-scaled.  Returns (B*H, N, Dh)."""
    BH, N, Dh = q.shape
    sub = _sublane_align(q.dtype)

    # Pad the sequence to a multiple of 128 (guards _pick_tile; padded keys are
    # masked in-kernel, padded query rows are sliced off below).
    Np = N if N % 128 == 0 else _round_up(N, 128)
    masked = Np != N
    if masked:
        pad = ((0, 0), (0, Np - N), (0, 0))
        q, k, v = jnp.pad(q, pad), jnp.pad(k, pad), jnp.pad(v, pad)

    tq = _pick_tile(Np, tq, sub)
    tkv = _pick_tile(Np, tkv, 128)       # lane dim of the score block: 128-aligned
    grid = (BH, Np // tq, Np // tkv)

    q_spec = pl.BlockSpec((1, tq, Dh), lambda bh, qi, ki: (bh, qi, 0))
    kv_spec = pl.BlockSpec((1, tkv, Dh), lambda bh, qi, ki: (bh, ki, 0))
    o_spec = pl.BlockSpec((1, tq, Dh), lambda bh, qi, ki: (bh, qi, 0))

    itemsize = jnp.dtype(q.dtype).itemsize
    cost = pl.CostEstimate(
        flops=4 * BH * Np * Np * Dh,
        transcendentals=BH * Np * Np,
        bytes_accessed=4 * BH * Np * Dh * itemsize)

    kernel = functools.partial(_flash_kernel, block_kv=tkv, kv_len=N,
                               masked=masked)
    out = pl.pallas_call(
        kernel,
        out_shape=jax.ShapeDtypeStruct((BH, Np, Dh), q.dtype),
        grid=grid,
        in_specs=[q_spec, kv_spec, kv_spec],
        out_specs=o_spec,
        scratch_shapes=[
            pltpu.VMEM((tq, Dh), jnp.float32),     # output accumulator
            pltpu.VMEM((tq, 128), jnp.float32),    # running max m (lane-replicated)
            pltpu.VMEM((tq, 128), jnp.float32),    # running sum l (lane-replicated)
        ],
        compiler_params=pltpu.CompilerParams(
            dimension_semantics=("parallel", "parallel", "arbitrary"),
            vmem_limit_bytes=_VMEM_LIMIT),
        cost_estimate=cost,
    )(q, k, v)

    if masked:
        out = out[:, :N, :]
    return out


# ----------------------------------------------------------------------------
# Module forward
# ----------------------------------------------------------------------------
def attention_forward(x, w_qkv, w_out, *, heads, dim_head):
    """Equivalent of Attention.forward(x) with mask=None.

    x:      (B, N, dim)
    w_qkv:  (3 * heads * dim_head, dim)   -- nn.Linear weight (out, in)
    w_out:  (dim, heads * dim_head)       -- nn.Linear weight (out, in)
    """
    B, N, dim = x.shape
    HD = heads * dim_head
    assert w_qkv.shape == (3 * HD, dim) and w_out.shape == (dim, HD)

    # Fold 1/sqrt(dim_head) into the q rows of the projection weight:
    # zero runtime cost (vs. scaling the NxN score matrix per step).
    scale = float(dim_head) ** -0.5
    w_qkv = jnp.concatenate([w_qkv[:HD] * scale, w_qkv[HD:]], axis=0)

    # Fused to_qkv projection (one tiled matmul, output/HD axis tiled on the
    # grid so VMEM stays bounded even for large HD).
    qkv = pallas_linear(x.reshape(B * N, dim), w_qkv)            # (B*N, 3*HD)

    # 'b n (c h d) -> c (b h) n d': heads become a grid axis of the flash
    # kernel (full-block refs, no per-head lane slicing inside the kernel).
    qkv = qkv.reshape(B, N, 3, heads, dim_head).transpose(2, 0, 3, 1, 4)
    qkv = qkv.reshape(3, B * heads, N, dim_head)
    q, k, v = qkv[0], qkv[1], qkv[2]

    o = pallas_flash_mha(q, k, v)                                # (B*H, N, Dh)

    # '(b h) n d -> (b n) (h d)'
    o = o.reshape(B, heads, N, dim_head).transpose(0, 2, 1, 3).reshape(B * N, HD)

    # to_out projection (weight kept in (out, in) layout).
    y = pallas_linear(o, w_out)                                  # (B*N, dim)
    return y.reshape(B, N, dim)


# ----------------------------------------------------------------------------
# Pure-JAX reference for verification
# ----------------------------------------------------------------------------
def reference_forward(x, w_qkv, w_out, *, heads, dim_head):
    B, N, dim = x.shape
    HD = heads * dim_head
    qkv = x @ w_qkv.T
    q, k, v = jnp.split(qkv, 3, axis=-1)

    def split_heads(t):
        return t.reshape(B, N, heads, dim_head).transpose(0, 2, 1, 3)

    q, k, v = split_heads(q), split_heads(k), split_heads(v)
    s = jnp.einsum("bhid,bhjd->bhij", q, k) * (float(dim_head) ** -0.5)
    p = jax.nn.softmax(s, axis=-1)
    o = jnp.einsum("bhij,bhjd->bhid", p, v)
    o = o.transpose(0, 2, 1, 3).reshape(B, N, HD)
    return o @ w_out.T


# ----------------------------------------------------------------------------
if __name__ == "__main__":
    # Small shapes consistent with the module (dim_head matches the module
    # default of 64): dim=32, heads=2, dim_head=64.
    heads, dim_head, dim = 2, 64, 32
    HD = heads * dim_head

    key = jax.random.PRNGKey(0)
    kx, kqkv, kout, kx2 = jax.random.split(key, 4)

    # nn.Linear stores weights as (out_features, in_features)
    w_qkv = jax.random.normal(kqkv, (3 * HD, dim), dtype=jnp.float32) * 0.05
    w_out = jax.random.normal(kout, (dim, HD), dtype=jnp.float32) * 0.05

    fwd = jax.jit(functools.partial(attention_forward,
                                    heads=heads, dim_head=dim_head))

    # Case 1: aligned sequence length (clean, unmasked path).
    B, N = 2, 128
    x = jax.random.normal(kx, (B, N, dim), dtype=jnp.float32)
    y = jax.block_until_ready(fwd(x, w_qkv, w_out))
    y_ref = reference_forward(x, w_qkv, w_out, heads=heads, dim_head=dim_head)
    assert y.shape == (B, N, dim)
    assert jnp.allclose(y, y_ref, atol=2e-3, rtol=2e-3), "mismatch (aligned N)"

    # Case 2: unaligned sequence length exercises the internal pad + kv mask.
    B2, N2 = 2, 120
    x2 = jax.random.normal(kx2, (B2, N2, dim), dtype=jnp.float32)
    y2 = jax.block_until_ready(fwd(x2, w_qkv, w_out))
    y2_ref = reference_forward(x2, w_qkv, w_out, heads=heads, dim_head=dim_head)
    assert y2.shape == (B2, N2, dim)
    assert jnp.allclose(y2, y2_ref, atol=2e-3, rtol=2e-3), "mismatch (padded N)"

    print("KERNEL_OK")
</pallas_src>

<mosaic_0001>
module attributes {stable_mosaic.version = 11 : i64} {
  func.func @_linear_kernel(%arg0: i32, %arg1: i32, %arg2: i32, %arg3: memref<256x32xf32, #tpu.memory_space<vmem>>, %arg4: memref<128x32xf32, #tpu.memory_space<vmem>>, %arg5: memref<256x128xf32, #tpu.memory_space<vmem>>, %arg6: memref<256x128xf32, #tpu.memory_space<vmem>>) attributes {dimension_semantics = [#tpu.dimension_semantics<parallel>, #tpu.dimension_semantics<parallel>, #tpu.dimension_semantics<arbitrary>], iteration_bounds = array<i64: 1, 3, 1>, scalar_prefetch = 0 : i64, scratch_operands = 1 : i64, tpu.core_type = #tpu.core_type<tc>, window_params = [{transform_indices = @transform_0, window_bounds = array<i64: 256, 32>}, {transform_indices = @transform_1, window_bounds = array<i64: 128, 32>}, {transform_indices = @transform_2, window_bounds = array<i64: 256, 128>}]} {
    %c0_i32 = arith.constant 0 : i32
    %0 = arith.cmpi eq, %arg2, %c0_i32 : i32
    %1 = arith.extui %0 : i1 to i32
    %c0_i32_0 = arith.constant 0 : i32
    %2 = arith.cmpi ne, %1, %c0_i32_0 : i32
    scf.if %2 {
      %cst_10 = arith.constant 0.000000e+00 : f32
      %12 = vector.broadcast %cst_10 : f32 to vector<256x128xf32>
      %c0_11 = arith.constant 0 : index
      %c0_12 = arith.constant 0 : index
      %13 = vector.load %arg6[%c0_11, %c0_12] : memref<256x128xf32, #tpu.memory_space<vmem>>, vector<256x128xf32>
      tpu.vector_store %arg6[%c0_11, %c0_12], %12 {strides = array<i32>} : memref<256x128xf32, #tpu.memory_space<vmem>>, vector<256x128xf32>,
    } else {
    }
    %c0 = arith.constant 0 : index
    %c0_1 = arith.constant 0 : index
    %3 = vector.load %arg6[%c0, %c0_1] : memref<256x128xf32, #tpu.memory_space<vmem>>, vector<256x128xf32>
    %c0_2 = arith.constant 0 : index
    %c0_3 = arith.constant 0 : index
    %4 = vector.load %arg3[%c0_2, %c0_3] : memref<256x32xf32, #tpu.memory_space<vmem>>, vector<256x32xf32>
    %c0_4 = arith.constant 0 : index
    %c0_5 = arith.constant 0 : index
    %5 = vector.load %arg4[%c0_4, %c0_5] : memref<128x32xf32, #tpu.memory_space<vmem>>, vector<128x32xf32>
    %cst = arith.constant dense<0.000000e+00> : vector<256x128xf32>
    %6 = tpu.matmul %4, %5, %cst {dimension_numbers = #tpu.dot_dimension_numbers<[1], [1], [0], [0], [0, 0, 1, 0], [], []>} : vector<256x32xf32>, vector<128x32xf32>, vector<256x128xf32> -> vector<256x128xf32>
    %7 = arith.addf %3, %6 : vector<256x128xf32>
    %c0_6 = arith.constant 0 : index
    %c0_7 = arith.constant 0 : index
    %8 = vector.load %arg6[%c0_6, %c0_7] : memref<256x128xf32, #tpu.memory_space<vmem>>, vector<256x128xf32>
    tpu.vector_store %arg6[%c0_6, %c0_7], %7 {strides = array<i32>} : memref<256x128xf32, #tpu.memory_space<vmem>>, vector<256x128xf32>,
    %c0_i32_8 = arith.constant 0 : i32
    %9 = arith.cmpi eq, %arg2, %c0_i32_8 : i32
    %10 = arith.extui %9 : i1 to i32
    %c0_i32_9 = arith.constant 0 : i32
    %11 = arith.cmpi ne, %10, %c0_i32_9 : i32
    scf.if %11 {
      %c0_10 = arith.constant 0 : index
      %c0_11 = arith.constant 0 : index
      %12 = vector.load %arg6[%c0_10, %c0_11] : memref<256x128xf32, #tpu.memory_space<vmem>>, vector<256x128xf32>
      %c0_12 = arith.constant 0 : index
      %c0_13 = arith.constant 0 : index
      %13 = vector.load %arg5[%c0_12, %c0_13] : memref<256x128xf32, #tpu.memory_space<vmem>>, vector<256x128xf32>
      tpu.vector_store %arg5[%c0_12, %c0_13], %12 {strides = array<i32>} : memref<256x128xf32, #tpu.memory_space<vmem>>, vector<256x128xf32>,
    } else {
    }
    return
  }
  func.func @transform_0(%arg0: i32, %arg1: i32, %arg2: i32) -> (i32, i32) {
    %c0_i32 = arith.constant 0 : i32
    return %arg0, %arg2 : i32, i32
  }
  func.func @transform_1(%arg0: i32, %arg1: i32, %arg2: i32) -> (i32, i32) {
    %c0_i32 = arith.constant 0 : i32
    return %arg1, %arg2 : i32, i32
  }
  func.func @transform_2(%arg0: i32, %arg1: i32, %arg2: i32) -> (i32, i32) {
    %c0_i32 = arith.constant 0 : i32
    return %arg0, %arg1 : i32, i32
  }
}

module attributes {stable_mosaic.version = 11 : i64} {
  func.func @_flash_kernel(%arg0: i32, %arg1: i32, %arg2: i32, %arg3: memref<1x128x64xf32, #tpu.memory_space<vmem>>, %arg4: memref<1x128x64xf32, #tpu.memory_space<vmem>>, %arg5: memref<1x128x64xf32, #tpu.memory_space<vmem>>, %arg6: memref<1x128x64xf32, #tpu.memory_space<vmem>>, %arg7: memref<128x64xf32, #tpu.memory_space<vmem>>, %arg8: memref<128x128xf32, #tpu.memory_space<vmem>>, %arg9: memref<128x128xf32, #tpu.memory_space<vmem>>) attributes {dimension_semantics = [#tpu.dimension_semantics<parallel>, #tpu.dimension_semantics<parallel>, #tpu.dimension_semantics<arbitrary>], iteration_bounds = array<i64: 4, 1, 1>, scalar_prefetch = 0 : i64, scratch_operands = 3 : i64, tpu.core_type = #tpu.core_type<tc>, window_params = [{transform_indices = @transform_0, window_bounds = array<i64: 1, 128, 64>}, {transform_indices = @transform_1, window_bounds = array<i64: 1, 128, 64>}, {transform_indices = @transform_2, window_bounds = array<i64: 1, 128, 64>}, {transform_indices = @transform_3, window_bounds = array<i64: 1, 128, 64>}]} {
    %c0_i32 = arith.constant 0 : i32
    %0 = arith.cmpi eq, %arg2, %c0_i32 : i32
    %1 = arith.extui %0 : i1 to i32
    %c0_i32_0 = arith.constant 0 : i32
    %2 = arith.cmpi ne, %1, %c0_i32_0 : i32
    scf.if %2 {
      %cst_26 = arith.constant 0xFF800000 : f32
      %39 = vector.broadcast %cst_26 : f32 to vector<128x128xf32>
      %c0_27 = arith.constant 0 : index
      %c0_28 = arith.constant 0 : index
      %40 = vector.load %arg8[%c0_27, %c0_28] : memref<128x128xf32, #tpu.memory_space<vmem>>, vector<128x128xf32>
      tpu.vector_store %arg8[%c0_27, %c0_28], %39 {strides = array<i32>} : memref<128x128xf32, #tpu.memory_space<vmem>>, vector<128x128xf32>,
      %cst_29 = arith.constant 0.000000e+00 : f32
      %41 = vector.broadcast %cst_29 : f32 to vector<128x128xf32>
      %c0_30 = arith.constant 0 : index
      %c0_31 = arith.constant 0 : index
      %42 = vector.load %arg9[%c0_30, %c0_31] : memref<128x128xf32, #tpu.memory_space<vmem>>, vector<128x128xf32>
      tpu.vector_store %arg9[%c0_30, %c0_31], %41 {strides = array<i32>} : memref<128x128xf32, #tpu.memory_space<vmem>>, vector<128x128xf32>,
      %cst_32 = arith.constant 0.000000e+00 : f32
      %43 = vector.broadcast %cst_32 : f32 to vector<128x64xf32>
      %c0_33 = arith.constant 0 : index
      %c0_34 = arith.constant 0 : index
      %44 = vector.load %arg7[%c0_33, %c0_34] : memref<128x64xf32, #tpu.memory_space<vmem>>, vector<128x64xf32>
      tpu.vector_store %arg7[%c0_33, %c0_34], %43 {strides = array<i32>} : memref<128x64xf32, #tpu.memory_space<vmem>>, vector<128x64xf32>,
    } else {
    }
    %c0 = arith.constant 0 : index
    %c0_1 = arith.constant 0 : index
    %c0_2 = arith.constant 0 : index
    %3 = vector.load %arg3[%c0, %c0_1, %c0_2] : memref<1x128x64xf32, #tpu.memory_space<vmem>>, vector<1x128x64xf32>
    %4 = vector.shape_cast %3 : vector<1x128x64xf32> to vector<128x64xf32>
    %c0_3 = arith.constant 0 : index
    %c0_4 = arith.constant 0 : index
    %c0_5 = arith.constant 0 : index
    %5 = vector.load %arg4[%c0_3, %c0_4, %c0_5] : memref<1x128x64xf32, #tpu.memory_space<vmem>>, vector<1x128x64xf32>
    %6 = vector.shape_cast %5 : vector<1x128x64xf32> to vector<128x64xf32>
    %c0_6 = arith.constant 0 : index
    %c0_7 = arith.constant 0 : index
    %c0_8 = arith.constant 0 : index
    %7 = vector.load %arg5[%c0_6, %c0_7, %c0_8] : memref<1x128x64xf32, #tpu.memory_space<vmem>>, vector<1x128x64xf32>
    %8 = vector.shape_cast %7 : vector<1x128x64xf32> to vector<128x64xf32>
    %cst = arith.constant dense<0.000000e+00> : vector<128x128xf32>
    %9 = tpu.matmul %4, %6, %cst {dimension_numbers = #tpu.dot_dimension_numbers<[1], [1], [0], [0], [0, 0, 1, 0], [], []>} : vector<128x64xf32>, vector<128x64xf32>, vector<128x128xf32> -> vector<128x128xf32>
    %c0_9 = arith.constant 0 : index
    %c0_10 = arith.constant 0 : index
    %10 = vector.load %arg8[%c0_9, %c0_10] : memref<128x128xf32, #tpu.memory_space<vmem>>, vector<128x128xf32>
    %cst_11 = arith.constant dense<0xFF800000> : vector<128xf32>
    %11 = vector.multi_reduction <maximumf>, %9, %cst_11 [1] : vector<128x128xf32> to vector<128xf32>
    %12 = vector.shape_cast %11 : vector<128xf32> to vector<128x1xf32>
    %13 = vector.broadcast %12 : vector<128x1xf32> to vector<128x128xf32>
    %14 = arith.maximumf %10, %13 : vector<128x128xf32>
    %15 = arith.subf %10, %14 : vector<128x128xf32>
    %16 = math.exp %15 : vector<128x128xf32>
    %17 = vector.extract_strided_slice %14 {offsets = [0, 0], sizes = [128, 1], strides = [1, 1]} : vector<128x128xf32> to vector<128x1xf32>
    %18 = vector.broadcast %17 : vector<128x1xf32> to vector<128x128xf32>
    %19 = arith.subf %9, %18 : vector<128x128xf32>
    %20 = math.exp %19 : vector<128x128xf32>
    %c0_12 = arith.constant 0 : index
    %c0_13 = arith.constant 0 : index
    %21 = vector.load %arg9[%c0_12, %c0_13] : memref<128x128xf32, #tpu.memory_space<vmem>>, vector<128x128xf32>
    %22 = arith.mulf %16, %21 : vector<128x128xf32>
    %cst_14 = arith.constant dense<0.000000e+00> : vector<128xf32>
    %23 = vector.multi_reduction <add>, %20, %cst_14 [1] : vector<128x128xf32> to vector<128xf32>
    %24 = vector.shape_cast %23 : vector<128xf32> to vector<128x1xf32>
    %25 = vector.broadcast %24 : vector<128x1xf32> to vector<128x128xf32>
    %26 = arith.addf %22, %25 : vector<128x128xf32>
    %c0_15 = arith.constant 0 : index
    %c0_16 = arith.constant 0 : index
    %27 = vector.load %arg9[%c0_15, %c0_16] : memref<128x128xf32, #tpu.memory_space<vmem>>, vector<128x128xf32>
    tpu.vector_store %arg9[%c0_15, %c0_16], %26 {strides = array<i32>} : memref<128x128xf32, #tpu.memory_space<vmem>>, vector<128x128xf32>,
    %28 = vector.extract_strided_slice %16 {offsets = [0, 0], sizes = [128, 1], strides = [1, 1]} : vector<128x128xf32> to vector<128x1xf32>
    %c0_17 = arith.constant 0 : index
    %c0_18 = arith.constant 0 : index
    %29 = vector.load %arg7[%c0_17, %c0_18] : memref<128x64xf32, #tpu.memory_space<vmem>>, vector<128x64xf32>
    %30 = vector.broadcast %28 : vector<128x1xf32> to vector<128x64xf32>
    %31 = arith.mulf %30, %29 : vector<128x64xf32>
    %cst_19 = arith.constant dense<0.000000e+00> : vector<128x64xf32>
    %32 = tpu.matmul %20, %8, %cst_19 {dimension_numbers = #tpu.dot_dimension_numbers<[1], [0], [0], [1], [0, 0, 1, 1], [], []>} : vector<128x128xf32>, vector<128x64xf32>, vector<128x64xf32> -> vector<128x64xf32>
    %33 = arith.addf %31, %32 : vector<128x64xf32>
    %c0_20 = arith.constant 0 : index
    %c0_21 = arith.constant 0 : index
    %34 = vector.load %arg7[%c0_20, %c0_21] : memref<128x64xf32, #tpu.memory_space<vmem>>, vector<128x64xf32>
    tpu.vector_store %arg7[%c0_20, %c0_21], %33 {strides = array<i32>} : memref<128x64xf32, #tpu.memory_space<vmem>>, vector<128x64xf32>,
    %c0_22 = arith.constant 0 : index
    %c0_23 = arith.constant 0 : index
    %35 = vector.load %arg8[%c0_22, %c0_23] : memref<128x128xf32, #tpu.memory_space<vmem>>, vector<128x128xf32>
    tpu.vector_store %arg8[%c0_22, %c0_23], %14 {strides = array<i32>} : memref<128x128xf32, #tpu.memory_space<vmem>>, vector<128x128xf32>,
    %c0_i32_24 = arith.constant 0 : i32
    %36 = arith.cmpi eq, %arg2, %c0_i32_24 : i32
    %37 = arith.extui %36 : i1 to i32
    %c0_i32_25 = arith.constant 0 : i32
    %38 = arith.cmpi ne, %37, %c0_i32_25 : i32
    scf.if %38 {
      %c0_26 = arith.constant 0 : index
      %c0_27 = arith.constant 0 : index
      %39 = vector.load %arg9[%c0_26, %c0_27] : memref<128x128xf32, #tpu.memory_space<vmem>>, vector<128x1xf32>
      %40 = tpu.reciprocal %39 : vector<128x1xf32> -> vector<128x1xf32>
      %c0_28 = arith.constant 0 : index
      %c0_29 = arith.constant 0 : index
      %41 = vector.load %arg7[%c0_28, %c0_29] : memref<128x64xf32, #tpu.memory_space<vmem>>, vector<128x64xf32>
      %42 = vector.broadcast %40 : vector<128x1xf32> to vector<128x64xf32>
      %43 = arith.mulf %41, %42 : vector<128x64xf32>
      %c0_30 = arith.constant 0 : index
      %c0_31 = arith.constant 0 : index
      %c0_32 = arith.constant 0 : index
      %44 = vector.load %arg6[%c0_30, %c0_31, %c0_32] : memref<1x128x64xf32, #tpu.memory_space<vmem>>, vector<1x128x64xf32>
      %45 = vector.shape_cast %44 : vector<1x128x64xf32> to vector<128x64xf32>
      %46 = vector.shape_cast %43 : vector<128x64xf32> to vector<1x128x64xf32>
      tpu.vector_store %arg6[%c0_30, %c0_31, %c0_32], %46 {strides = array<i32>} : memref<1x128x64xf32, #tpu.memory_space<vmem>>, vector<1x128x64xf32>,
    } else {
    }
    return
  }
  func.func @transform_0(%arg0: i32, %arg1: i32, %arg2: i32) -> (i32, i32, i32) {
    %c0_i32 = arith.constant 0 : i32
    %c0_i32_0 = arith.constant 0 : i32
    return %arg0, %arg1, %c0_i32 : i32, i32, i32
  }
  func.func @transform_1(%arg0: i32, %arg1: i32, %arg2: i32) -> (i32, i32, i32) {
    %c0_i32 = arith.constant 0 : i32
    %c0_i32_0 = arith.constant 0 : i32
    return %arg0, %arg2, %c0_i32 : i32, i32, i32
  }
  func.func @transform_2(%arg0: i32, %arg1: i32, %arg2: i32) -> (i32, i32, i32) {
    %c0_i32 = arith.constant 0 : i32
    %c0_i32_0 = arith.constant 0 : i32
    return %arg0, %arg2, %c0_i32 : i32, i32, i32
  }
  func.func @transform_3(%arg0: i32, %arg1: i32, %arg2: i32) -> (i32, i32, i32) {
    %c0_i32 = arith.constant 0 : i32
    %c0_i32_0 = arith.constant 0 : i32
    return %arg0, %arg1, %c0_i32 : i32, i32, i32
  }
}

module attributes {stable_mosaic.version = 11 : i64} {
  func.func @_linear_kernel(%arg0: i32, %arg1: i32, %arg2: i32, %arg3: memref<256x128xf32, #tpu.memory_space<vmem>>, %arg4: memref<32x128xf32, #tpu.memory_space<vmem>>, %arg5: memref<256x32xf32, #tpu.memory_space<vmem>>, %arg6: memref<256x32xf32, #tpu.memory_space<vmem>>) attributes {dimension_semantics = [#tpu.dimension_semantics<parallel>, #tpu.dimension_semantics<parallel>, #tpu.dimension_semantics<arbitrary>], iteration_bounds = array<i64: 1, 1, 1>, scalar_prefetch = 0 : i64, scratch_operands = 1 : i64, tpu.core_type = #tpu.core_type<tc>, window_params = [{transform_indices = @transform_0, window_bounds = array<i64: 256, 128>}, {transform_indices = @transform_1, window_bounds = array<i64: 32, 128>}, {transform_indices = @transform_2, window_bounds = array<i64: 256, 32>}]} {
    %c0_i32 = arith.constant 0 : i32
    %0 = arith.cmpi eq, %arg2, %c0_i32 : i32
    %1 = arith.extui %0 : i1 to i32
    %c0_i32_0 = arith.constant 0 : i32
    %2 = arith.cmpi ne, %1, %c0_i32_0 : i32
    scf.if %2 {
      %cst_10 = arith.constant 0.000000e+00 : f32
      %12 = vector.broadcast %cst_10 : f32 to vector<256x32xf32>
      %c0_11 = arith.constant 0 : index
      %c0_12 = arith.constant 0 : index
      %13 = vector.load %arg6[%c0_11, %c0_12] : memref<256x32xf32, #tpu.memory_space<vmem>>, vector<256x32xf32>
      tpu.vector_store %arg6[%c0_11, %c0_12], %12 {strides = array<i32>} : memref<256x32xf32, #tpu.memory_space<vmem>>, vector<256x32xf32>,
    } else {
    }
    %c0 = arith.constant 0 : index
    %c0_1 = arith.constant 0 : index
    %3 = vector.load %arg6[%c0, %c0_1] : memref<256x32xf32, #tpu.memory_space<vmem>>, vector<256x32xf32>
    %c0_2 = arith.constant 0 : index
    %c0_3 = arith.constant 0 : index
    %4 = vector.load %arg3[%c0_2, %c0_3] : memref<256x128xf32, #tpu.memory_space<vmem>>, vector<256x128xf32>
    %c0_4 = arith.constant 0 : index
    %c0_5 = arith.constant 0 : index
    %5 = vector.load %arg4[%c0_4, %c0_5] : memref<32x128xf32, #tpu.memory_space<vmem>>, vector<32x128xf32>
    %cst = arith.constant dense<0.000000e+00> : vector<256x32xf32>
    %6 = tpu.matmul %4, %5, %cst {dimension_numbers = #tpu.dot_dimension_numbers<[1], [1], [0], [0], [0, 0, 1, 0], [], []>} : vector<256x128xf32>, vector<32x128xf32>, vector<256x32xf32> -> vector<256x32xf32>
    %7 = arith.addf %3, %6 : vector<256x32xf32>
    %c0_6 = arith.constant 0 : index
    %c0_7 = arith.constant 0 : index
    %8 = vector.load %arg6[%c0_6, %c0_7] : memref<256x32xf32, #tpu.memory_space<vmem>>, vector<256x32xf32>
    tpu.vector_store %arg6[%c0_6, %c0_7], %7 {strides = array<i32>} : memref<256x32xf32, #tpu.memory_space<vmem>>, vector<256x32xf32>,
    %c0_i32_8 = arith.constant 0 : i32
    %9 = arith.cmpi eq, %arg2, %c0_i32_8 : i32
    %10 = arith.extui %9 : i1 to i32
    %c0_i32_9 = arith.constant 0 : i32
    %11 = arith.cmpi ne, %10, %c0_i32_9 : i32
    scf.if %11 {
      %c0_10 = arith.constant 0 : index
      %c0_11 = arith.constant 0 : index
      %12 = vector.load %arg6[%c0_10, %c0_11] : memref<256x32xf32, #tpu.memory_space<vmem>>, vector<256x32xf32>
      %c0_12 = arith.constant 0 : index
      %c0_13 = arith.constant 0 : index
      %13 = vector.load %arg5[%c0_12, %c0_13] : memref<256x32xf32, #tpu.memory_space<vmem>>, vector<256x32xf32>
      tpu.vector_store %arg5[%c0_12, %c0_13], %12 {strides = array<i32>} : memref<256x32xf32, #tpu.memory_space<vmem>>, vector<256x32xf32>,
    } else {
    }
    return
  }
  func.func @transform_0(%arg0: i32, %arg1: i32, %arg2: i32) -> (i32, i32) {
    %c0_i32 = arith.constant 0 : i32
    return %arg0, %arg2 : i32, i32
  }
  func.func @transform_1(%arg0: i32, %arg1: i32, %arg2: i32) -> (i32, i32) {
    %c0_i32 = arith.constant 0 : i32
    return %arg1, %arg2 : i32, i32
  }
  func.func @transform_2(%arg0: i32, %arg1: i32, %arg2: i32) -> (i32, i32) {
    %c0_i32 = arith.constant 0 : i32
    return %arg0, %arg1 : i32, i32
  }
}

</mosaic_0001>

<bundles_post_ra>
// kernel: attention_forward.3
= control target key start
LH: loop header
LB: loop body
LE: loop exit
PB: predicated region body
PF: predicated region fallthrough
CT: control target
= control target key end

     0   :  { %s1424_s9 = smov 0   ;;  %s1426_s10 = smov 0   ;;  %s1809_s0 = inlined_call_operand.vmem [shape: f32[256,32], index: 0, kind: input, shape index: {}]   ;;  %s1810_s1 = inlined_call_operand.vmem [shape: f32[384,32], index: 1, kind: input, shape index: {}]   ;;  %s1811_s2 = inlined_call_operand.vmem [shape: f32[256,384], index: 2, kind: output, shape index: {}]  }
   0x1   :  { %s1428_s11 = smov 0   ;;  %s1430_s12 = smov 0  }
   0x2   :  { %s1432_s13 = smov 0  }
   0x3 LB: > { %s1076_s14 = sadd.s32 4294967295, %s1407_s13   ;;  %s27_s15 = sadd.s32 1, %s1403_s12  ;;  %s1407_s13 = sphi %s1432_s13, %s12_s13   ;;  %s1403_s12 = sphi %s1430_s12, %s1818_s12   ;;  %s1399_s11 = sphi %s1428_s11, %s1817_s11   ;;  %s1395_s10 = sphi %s1426_s10, %s1816_s10   ;;  %s1391_s9 = sphi %s1424_s9, %s1815_s9  }
   0x4   : > { %p29_p0 = scmp.ge.s32.totalorder %s27_s15, 3  ;;  %s96_s16 = sadd.s32 1, %s1395_s10 }
   0x5   : > { %p106_p1 = scmp.ne.s32.totalorder %s1395_s10, %s1391_s9  ;;  %p107_p2 = scmp.eq.s32.totalorder %s1076_s14, 2 }
   0x6   : > { %s1820_s15 = smov (%p29_p0, %s27_s15), 0  ;;  %p1081_p4 = scmp.ge.s32.totalorder %s1407_s13, 1 }
   0x7   : > { %p1456_p3 = por %p107_p2, %p106_p1  ;;  %s92_s18 = ssub.s32 %s1403_s12, %s1820_s15 }
   0x8   : > { %p155_p5 = scmp.lt.s32.totalorder %s1407_s13, 4  ;;  %p94_p6 = scmp.eq.s32.totalorder %s92_s18, 0 }
   0xa   : > { %p156_p7 = pnand %p1081_p4, %p155_p5 }
   0xb   : > { %s1465_s19 = scalar_select %p94_p6, %s1395_s10, %s96_s16  }
   0xc   : > { %159 = sbr.rel (%p156_p7) target bundleno = 340 (0x154), region = 28  ;;  %s1083_s20 = sshll.u32 (!%p156_p7), %s1399_s11, 4  ;;  %vm322_vm0 = vcmask (!%p156_p7), 261120   ;;  %v274_v0 = vld [vmem:[%s1809_s0] sm:$0xff] (!%p156_p7)  ;;  %v275_v27 = vld [vmem:[%s1809_s0 + $0x8] sm:$0xff] (!%p156_p7)  ;;  %v276_v29 = vld [vmem:[%s1809_s0 + $0x10] sm:$0xff] (!%p156_p7) }
   0xd   : > { %v290_v1 = vld [vmem:[%s1809_s0 + $0x80] sm:$0xff] (!%p156_p7)  ;;  %p197_p8 = scmp.lt.s32.totalorder (!%p156_p7), %s1083_s20, 47  ;;  %1217 = vmatprep.mubr.msk.f32.mxu0 (!%p156_p7), %vm322_vm0, %v274_v0  ;;  %vm1483_vm1 = vmpackc.low (!%p156_p7), %vm322_vm0, %vm322_vm0  ;;  %v291_v28 = vld [vmem:[%s1809_s0 + $0x88] sm:$0xff] (!%p156_p7)  ;;  %s184_s29 = sand.u32 (!%p156_p7), 1, %s1391_s9  }
   0xe   : > { %1241 = vmatprep.mubr.msk.f32.mxu1 (!%p156_p7), %vm322_vm0, %v290_v1  ;;  %v292_v30 = vld [vmem:[%s1809_s0 + $0x90] sm:$0xff] (!%p156_p7)  ;;  %v277_v31 = vld [vmem:[%s1809_s0 + $0x18] sm:$0xff] (!%p156_p7)  ;;  %v278_v33 = vld [vmem:[%s1809_s0 + $0x20] sm:$0xff] (!%p156_p7)  ;;  %s1082_s30 = sshll.u32 (!%p156_p7), %s184_s29, 8 }
   0xf   : > { %v293_v32 = vld [vmem:[%s1809_s0 + $0x98] sm:$0xff] (!%p156_p7)  ;;  %v294_v34 = vld [vmem:[%s1809_s0 + $0xa0] sm:$0xff] (!%p156_p7)  ;;  %v279_v35 = vld [vmem:[%s1809_s0 + $0x28] sm:$0xff] (!%p156_p7)  ;;  %s1688_s3 = scalar_lea.vmem (!%p156_p7), [#allocation3], %s1082_s30 }
  0x10   : > { %v295_v36 = vld [vmem:[%s1809_s0 + $0xa8] sm:$0xff] (!%p156_p7)  ;;  %v280_v37 = vld [vmem:[%s1809_s0 + $0x30] sm:$0xff] (!%p156_p7)  ;;  %v281_v39 = vld [vmem:[%s1809_s0 + $0x38] sm:$0xff] (!%p156_p7) }
  0x11   : > { %v296_v38 = vld [vmem:[%s1809_s0 + $0xb0] sm:$0xff] (!%p156_p7)  ;;  %v297_v40 = vld [vmem:[%s1809_s0 + $0xb8] sm:$0xff] (!%p156_p7)  ;;  %v282_v41 = vld [vmem:[%s1809_s0 + $0x40] sm:$0xff] (!%p156_p7) }
  0x12   : > { %v298_v42 = vld [vmem:[%s1809_s0 + $0xc0] sm:$0xff] (!%p156_p7)  ;;  %v283_v43 = vld [vmem:[%s1809_s0 + $0x48] sm:$0xff] (!%p156_p7)  ;;  %v284_v45 = vld [vmem:[%s1809_s0 + $0x50] sm:$0xff] (!%p156_p7) }
  0x13   : > { %s1822_s20 = smov (!%p197_p8, %s1083_s20), 47  ;;  %v299_v44 = vld [vmem:[%s1809_s0 + $0xc8] sm:$0xff]  ;;  %v300_v46 = vld [vmem:[%s1809_s0 + $0xd0] sm:$0xff]  ;;  %v285_v47 = vld [vmem:[%s1809_s0 + $0x58] sm:$0xff]  ;;  %s1134_s9 = sshll.u32 (%p1456_p3), %s1399_s11, 3 }
  0x14   : > { %s1084_s25 = sshll.u32 %s1822_s20, 3  ;;  %v301_v48 = vld [vmem:[%s1809_s0 + $0xd8] sm:$0xff]  ;;  %v286_v49 = vld [vmem:[%s1809_s0 + $0x60] sm:$0xff]  ;;  %v287_v51 = vld [vmem:[%s1809_s0 + $0x68] sm:$0xff]  ;;  %s1731_s6 = scalar_lea.vmem (%p1456_p3), %s1811_s2, %s1134_s9 }
  0x15   : > { %s1479_s28 = scalar_lea.vmem %s1810_s1, %s1084_s25  ;;  %v302_v50 = vld [vmem:[%s1809_s0 + $0xe0] sm:$0xff]  ;;  %v303_v52 = vld [vmem:[%s1809_s0 + $0xe8] sm:$0xff]  ;;  %v288_v53 = vld [vmem:[%s1809_s0 + $0x70] sm:$0xff] }
  0x16   : > { %v306_v3 = vld [vmem:[%s1479_s28] sm:$0xff]  ;;  %v307_v4 = vld [vmem:[%s1479_s28 + $0x8] sm:$0xff]  ;;  %v308_v5 = vld [vmem:[%s1479_s28 + $0x10] sm:$0xff] }
  0x17   : > { %v1265_v6 = vpack.c.bf16 %v307_v4, %v306_v3  ;;  %v309_v7 = vld [vmem:[%s1479_s28 + $0x18] sm:$0xff]  ;;  %v310_v9 = vld [vmem:[%s1479_s28 + $0x20] sm:$0xff]  ;;  %v311_v10 = vld [vmem:[%s1479_s28 + $0x28] sm:$0xff] }
  0x18   : > { %v1271_v8 = vpack.c.bf16 %v309_v7, %v308_v5  ;;  %v1277_v11 = vpack.c.bf16 %v311_v10, %v310_v9  ;;  %v312_v12 = vld [vmem:[%s1479_s28 + $0x30] sm:$0xff]  ;;  %v313_v13 = vld [vmem:[%s1479_s28 + $0x38] sm:$0xff]  ;;  %v314_v15 = vld [vmem:[%s1479_s28 + $0x40] sm:$0xff] }
  0x19   : > { %1267 = vmatprep.subr.msk.bf16.mxu0 %vm1483_vm1, %v1265_v6  ;;  %1313 = vmatprep.subr.msk.bf16.mxu1 %vm1483_vm1, %v1265_v6  ;;  %v1283_v14 = vpack.c.bf16 %v313_v13, %v312_v12  ;;  %v315_v16 = vld [vmem:[%s1479_s28 + $0x48] sm:$0xff]  ;;  %v316_v18 = vld [vmem:[%s1479_s28 + $0x50] sm:$0xff]  ;;  %v317_v19 = vld [vmem:[%s1479_s28 + $0x58] sm:$0xff] }
  0x1a   : > { %1270 = vmatpush3.bf16.xpose.msk.msra.mxu0 %vm1483_vm1, %v1265_v6  ;;  %1321 = vmatpush3.bf16.xpose.msk.msra.mxu1 %vm1483_vm1, %v1265_v6  ;;  %v1289_v17 = vpack.c.bf16 %v315_v16, %v314_v15  ;;  %v1295_v20 = vpack.c.bf16 %v317_v19, %v316_v18  ;;  %v318_v21 = vld [vmem:[%s1479_s28 + $0x60] sm:$0xff]  ;;  %v319_v22 = vld [vmem:[%s1479_s28 + $0x68] sm:$0xff]  ;;  %v320_v24 = vld [vmem:[%s1479_s28 + $0x70] sm:$0xff] }
  0x1b   : > { %1273 = vmatprep.subr.msk.bf16.mxu0 %vm1483_vm1, %v1271_v8  ;;  %1314 = vmatprep.subr.msk.bf16.mxu1 %vm1483_vm1, %v1271_v8  ;;  %v1301_v23 = vpack.c.bf16 %v319_v22, %v318_v21  ;;  %v321_v25 = vld [vmem:[%s1479_s28 + $0x78] sm:$0xff]  ;;  %v304_v54 = vld [vmem:[%s1809_s0 + $0xf0] sm:$0xff] }
  0x1c   : > { %v1307_v26 = vpack.c.bf16 %v321_v25, %v320_v24  ;;  %v289_v55 = vld [vmem:[%s1809_s0 + $0x78] sm:$0xff] }
  0x1d   : > { %v305_v56 = vld [vmem:[%s1809_s0 + $0xf8] sm:$0xff] }
  0x22   : > { %1276 = vmatpush3.bf16.xpose.msk.msra.mxu0 %vm1483_vm1, %v1271_v8  ;;  %1322 = vmatpush3.bf16.xpose.msk.msra.mxu1 %vm1483_vm1, %v1271_v8 }
  0x23   : > { %1279 = vmatprep.subr.msk.bf16.mxu0 %vm1483_vm1, %v1277_v11  ;;  %1315 = vmatprep.subr.msk.bf16.mxu1 %vm1483_vm1, %v1277_v11 }
  0x2a   : > { %1282 = vmatpush3.bf16.xpose.msk.msra.mxu0 %vm1483_vm1, %v1277_v11  ;;  %1323 = vmatpush3.bf16.xpose.msk.msra.mxu1 %vm1483_vm1, %v1277_v11 }
  0x2b   : > { %1285 = vmatprep.subr.msk.bf16.mxu0 %vm1483_vm1, %v1283_v14  ;;  %1316 = vmatprep.subr.msk.bf16.mxu1 %vm1483_vm1, %v1283_v14 }
  0x32   : > { %1288 = vmatpush3.bf16.xpose.msk.msra.mxu0 %vm1483_vm1, %v1283_v14  ;;  %1324 = vmatpush3.bf16.xpose.msk.msra.mxu1 %vm1483_vm1, %v1283_v14 }
  0x33   : > { %1291 = vmatprep.subr.msk.bf16.mxu0 %vm1483_vm1, %v1289_v17  ;;  %1317 = vmatprep.subr.msk.bf16.mxu1 %vm1483_vm1, %v1289_v17 }
  0x3a   : > { %1294 = vmatpush3.bf16.xpose.msk.msra.mxu0 %vm1483_vm1, %v1289_v17  ;;  %1325 = vmatpush3.bf16.xpose.msk.msra.mxu1 %vm1483_vm1, %v1289_v17 }
  0x3b   : > { %1297 = vmatprep.subr.msk.bf16.mxu0 %vm1483_vm1, %v1295_v20  ;;  %1318 = vmatprep.subr.msk.bf16.mxu1 %vm1483_vm1, %v1295_v20 }
  0x42   : > { %1300 = vmatpush3.bf16.xpose.msk.msra.mxu0 %vm1483_vm1, %v1295_v20  ;;  %1326 = vmatpush3.bf16.xpose.msk.msra.mxu1 %vm1483_vm1, %v1295_v20 }
  0x43   : > { %1303 = vmatprep.subr.msk.bf16.mxu0 %vm1483_vm1, %v1301_v23  ;;  %1319 = vmatprep.subr.msk.bf16.mxu1 %vm1483_vm1, %v1301_v23 }
  0x4a   : > { %1306 = vmatpush3.bf16.xpose.msk.msra.mxu0 %vm1483_vm1, %v1301_v23  ;;  %1327 = vmatpush3.bf16.xpose.msk.msra.mxu1 %vm1483_vm1, %v1301_v23 }
  0x4b   : > { %1309 = vmatprep.subr.msk.bf16.mxu0 %vm1483_vm1, %v1307_v26  ;;  %1320 = vmatprep.subr.msk.bf16.mxu1 %vm1483_vm1, %v1307_v26 }
  0x52   : > { %1312 = vmatpush3.bf16.xpose.msk.msra.mxu0 %vm1483_vm1, %v1307_v26  ;;  %1328 = vmatpush3.bf16.xpose.msk.msra.mxu1 %vm1483_vm1, %v1307_v26 }
  0x59   : > { %1218 = vmatmul.mubr.msk.f32.vlgmr.msra.gmra.mrb[0].mxu0 %vm322_vm0, %v275_v27  ;;  %1242 = vmatmul.mubr.msk.f32.vlgmr.msra.gmra.mrb[0].mxu1 %vm322_vm0, %v291_v28 }
  0x5a   : > { %1220 = vmatprep.mubr.msk.f32.mxu0 %vm322_vm0, %v276_v29  ;;  %1244 = vmatprep.mubr.msk.f32.mxu1 %vm322_vm0, %v292_v30 }
  0x5d   : > { %1221 = vmatmul.mubr.msk.f32.gmra.mrb[2].mxu0 %vm322_vm0, %v277_v31  ;;  %1245 = vmatmul.mubr.msk.f32.gmra.mrb[2].mxu1 %vm322_vm0, %v293_v32 }
  0x5e   : > { %1223 = vmatprep.mubr.msk.f32.mxu0 %vm322_vm0, %v278_v33  ;;  %1247 = vmatprep.mubr.msk.f32.mxu1 %vm322_vm0, %v294_v34 }
  0x61   : > { %1224 = vmatmul.mubr.msk.f32.gmra.mrb[4].mxu0 %vm322_vm0, %v279_v35  ;;  %1248 = vmatmul.mubr.msk.f32.gmra.mrb[4].mxu1 %vm322_vm0, %v295_v36 }
  0x62   : > { %1226 = vmatprep.mubr.msk.f32.mxu0 %vm322_vm0, %v280_v37  ;;  %1250 = vmatprep.mubr.msk.f32.mxu1 %vm322_vm0, %v296_v38 }
  0x65   : > { %1227 = vmatmul.mubr.msk.f32.gmra.mrb[6].mxu0 %vm322_vm0, %v281_v39  ;;  %1251 = vmatmul.mubr.msk.f32.gmra.mrb[6].mxu1 %vm322_vm0, %v297_v40 }
  0x66   : > { %1229 = vmatprep.mubr.msk.f32.mxu0 %vm322_vm0, %v282_v41  ;;  %1253 = vmatprep.mubr.msk.f32.mxu1 %vm322_vm0, %v298_v42 }
  0x69   : > { %1230 = vmatmul.mubr.msk.f32.gmra.mrb[8].mxu0 %vm322_vm0, %v283_v43  ;;  %1254 = vmatmul.mubr.msk.f32.gmra.mrb[8].mxu1 %vm322_vm0, %v299_v44 }
  0x6a   : > { %1232 = vmatprep.mubr.msk.f32.mxu0 %vm322_vm0, %v284_v45  ;;  %1256 = vmatprep.mubr.msk.f32.mxu1 %vm322_vm0, %v300_v46 }
  0x6d   : > { %1233 = vmatmul.mubr.msk.f32.gmra.mrb[10].mxu0 %vm322_vm0, %v285_v47  ;;  %1257 = vmatmul.mubr.msk.f32.gmra.mrb[10].mxu1 %vm322_vm0, %v301_v48 }
  0x6e   : > { %1235 = vmatprep.mubr.msk.f32.mxu0 %vm322_vm0, %v286_v49  ;;  %1259 = vmatprep.mubr.msk.f32.mxu1 %vm322_vm0, %v302_v50 }
  0x71   : > { %1236 = vmatmul.mubr.msk.f32.gmra.mrb[12].mxu0 %vm322_vm0, %v287_v51  ;;  %1260 = vmatmul.mubr.msk.f32.gmra.mrb[12].mxu1 %vm322_vm0, %v303_v52 }
  0x72   : > { %1238 = vmatprep.mubr.msk.f32.mxu0 %vm322_vm0, %v288_v53  ;;  %1262 = vmatprep.mubr.msk.f32.mxu1 %vm322_vm0, %v304_v54 }
  0x75   : > { %1239 = vmatmul.mubr.msk.f32.gmra.mrb[14].mxu0 %vm322_vm0, %v289_v55  ;;  %1263 = vmatmul.mubr.msk.f32.gmra.mrb[14].mxu1 %vm322_vm0, %v305_v56 }
 0x12c   : > { %v1219_v57 = vpop.f32.mrb[0].mxu0  ;;  %v1243_v58 = vpop.f32.mrb[0].mxu1 }
 0x12d   : > { %792 = vst [vmem:[%s1688_s3 + $0x8] sm:$0xff] %v1219_v57  ;;  %808 = vst [vmem:[%s1688_s3 + $0x88] sm:$0xff] %v1243_v58  ;;  %v533_v59 = vpop.f32.mrb[1].mxu0  ;;  %v613_v60 = vpop.f32.mrb[1].mxu1 }
 0x12e   : > { %791 = vst [vmem:[%s1688_s3] sm:$0xff] %v533_v59  ;;  %807 = vst [vmem:[%s1688_s3 + $0x80] sm:$0xff] %v613_v60 }
 0x130   : > { %v1222_v61 = vpop.f32.mrb[2].mxu0  ;;  %v1246_v62 = vpop.f32.mrb[2].mxu1 }
 0x131   : > { %794 = vst [vmem:[%s1688_s3 + $0x18] sm:$0xff] %v1222_v61  ;;  %810 = vst [vmem:[%s1688_s3 + $0x98] sm:$0xff] %v1246_v62  ;;  %v543_v63 = vpop.f32.mrb[3].mxu0  ;;  %v623_v0 = vpop.f32.mrb[3].mxu1 }
 0x132   : > { %793 = vst [vmem:[%s1688_s3 + $0x10] sm:$0xff] %v543_v63  ;;  %809 = vst [vmem:[%s1688_s3 + $0x90] sm:$0xff] %v623_v0 }
 0x134   : > { %v1225_v1 = vpop.f32.mrb[4].mxu0  ;;  %v1249_v2 = vpop.f32.mrb[4].mxu1  ;;  %v926_v26 = vld [vmem:[%s1688_s3 + $0x8] sm:$0xff] (%p1456_p3) }
 0x135   : > { %796 = vst [vmem:[%s1688_s3 + $0x28] sm:$0xff] %v1225_v1  ;;  %812 = vst [vmem:[%s1688_s3 + $0xa8] sm:$0xff] %v1249_v2  ;;  %v553_v3 = vpop.f32.mrb[5].mxu0  ;;  %v633_v4 = vpop.f32.mrb[5].mxu1  ;;  %v924_v25 = vld [vmem:[%s1688_s3] sm:$0xff] (%p1456_p3)  ;;  %v958_v42 = vld [vmem:[%s1688_s3 + $0x88] sm:$0xff] (%p1456_p3) }
 0x136   : > { %795 = vst [vmem:[%s1688_s3 + $0x20] sm:$0xff] %v553_v3  ;;  %811 = vst [vmem:[%s1688_s3 + $0xa0] sm:$0xff] %v633_v4  ;;  %v956_v41 = vld [vmem:[%s1688_s3 + $0x80] sm:$0xff] (%p1456_p3) }
 0x137   : > { %925 = vst [vmem:[%s1731_s6] sm:$0xff] (%p1456_p3), %v924_v25  ;;  %927 = vst [vmem:[%s1731_s6 + $0x18] sm:$0xff] (%p1456_p3), %v926_v26 }
 0x138   : > { %v1228_v5 = vpop.f32.mrb[6].mxu0  ;;  %v1252_v6 = vpop.f32.mrb[6].mxu1  ;;  %v930_v28 = vld [vmem:[%s1688_s3 + $0x18] sm:$0xff] (%p1456_p3)  ;;  %957 = vst [vmem:[%s1731_s6 + $0x180] sm:$0xff] (%p1456_p3), %v956_v41  ;;  %959 = vst [vmem:[%s1731_s6 + $0x198] sm:$0xff] (%p1456_p3), %v958_v42 }
 0x139   : > { %798 = vst [vmem:[%s1688_s3 + $0x38] sm:$0xff] %v1228_v5  ;;  %814 = vst [vmem:[%s1688_s3 + $0xb8] sm:$0xff] %v1252_v6  ;;  %v563_v7 = vpop.f32.mrb[7].mxu0  ;;  %v643_v8 = vpop.f32.mrb[7].mxu1  ;;  %v928_v27 = vld [vmem:[%s1688_s3 + $0x10] sm:$0xff] (%p1456_p3)  ;;  %v962_v44 = vld [vmem:[%s1688_s3 + $0x98] sm:$0xff] (%p1456_p3) }
 0x13a   : > { %797 = vst [vmem:[%s1688_s3 + $0x30] sm:$0xff] %v563_v7  ;;  %813 = vst [vmem:[%s1688_s3 + $0xb0] sm:$0xff] %v643_v8  ;;  %v960_v43 = vld [vmem:[%s1688_s3 + $0x90] sm:$0xff] (%p1456_p3) }
 0x13b   : > { %929 = vst [vmem:[%s1731_s6 + $0x30] sm:$0xff] (%p1456_p3), %v928_v27  ;;  %931 = vst [vmem:[%s1731_s6 + $0x48] sm:$0xff] (%p1456_p3), %v930_v28 }
 0x13c   : > { %v1231_v9 = vpop.f32.mrb[8].mxu0  ;;  %v1255_v10 = vpop.f32.mrb[8].mxu1  ;;  %v934_v30 = vld [vmem:[%s1688_s3 + $0x28] sm:$0xff] (%p1456_p3)  ;;  %961 = vst [vmem:[%s1731_s6 + $0x1b0] sm:$0xff] (%p1456_p3), %v960_v43  ;;  %963 = vst [vmem:[%s1731_s6 + $0x1c8] sm:$0xff] (%p1456_p3), %v962_v44 }
 0x13d   : > { %800 = vst [vmem:[%s1688_s3 + $0x48] sm:$0xff] %v1231_v9  ;;  %816 = vst [vmem:[%s1688_s3 + $0xc8] sm:$0xff] %v1255_v10  ;;  %v573_v11 = vpop.f32.mrb[9].mxu0  ;;  %v653_v12 = vpop.f32.mrb[9].mxu1  ;;  %v932_v29 = vld [vmem:[%s1688_s3 + $0x20] sm:$0xff] (%p1456_p3)  ;;  %v966_v46 = vld [vmem:[%s1688_s3 + $0xa8] sm:$0xff] (%p1456_p3) }
 0x13e   : > { %799 = vst [vmem:[%s1688_s3 + $0x40] sm:$0xff] %v573_v11  ;;  %815 = vst [vmem:[%s1688_s3 + $0xc0] sm:$0xff] %v653_v12  ;;  %v964_v45 = vld [vmem:[%s1688_s3 + $0xa0] sm:$0xff] (%p1456_p3) }
 0x13f   : > { %933 = vst [vmem:[%s1731_s6 + $0x60] sm:$0xff] (%p1456_p3), %v932_v29  ;;  %935 = vst [vmem:[%s1731_s6 + $0x78] sm:$0xff] (%p1456_p3), %v934_v30 }
 0x140   : > { %v1234_v13 = vpop.f32.mrb[10].mxu0  ;;  %v1258_v14 = vpop.f32.mrb[10].mxu1  ;;  %v938_v32 = vld [vmem:[%s1688_s3 + $0x38] sm:$0xff] (%p1456_p3)  ;;  %965 = vst [vmem:[%s1731_s6 + $0x1e0] sm:$0xff] (%p1456_p3), %v964_v45  ;;  %967 = vst [vmem:[%s1731_s6 + $0x1f8] sm:$0xff] (%p1456_p3), %v966_v46 }
 0x141   : > { %802 = vst [vmem:[%s1688_s3 + $0x58] sm:$0xff] %v1234_v13  ;;  %818 = vst [vmem:[%s1688_s3 + $0xd8] sm:$0xff] %v1258_v14  ;;  %v583_v15 = vpop.f32.mrb[11].mxu0  ;;  %v663_v16 = vpop.f32.mrb[11].mxu1  ;;  %v936_v31 = vld [vmem:[%s1688_s3 + $0x30] sm:$0xff] (%p1456_p3)  ;;  %v970_v48 = vld [vmem:[%s1688_s3 + $0xb8] sm:$0xff] (%p1456_p3) }
 0x142   : > { %801 = vst [vmem:[%s1688_s3 + $0x50] sm:$0xff] %v583_v15  ;;  %817 = vst [vmem:[%s1688_s3 + $0xd0] sm:$0xff] %v663_v16  ;;  %v968_v47 = vld [vmem:[%s1688_s3 + $0xb0] sm:$0xff] (%p1456_p3) }
 0x143   : > { %937 = vst [vmem:[%s1731_s6 + $0x90] sm:$0xff] (%p1456_p3), %v936_v31  ;;  %939 = vst [vmem:[%s1731_s6 + $0xa8] sm:$0xff] (%p1456_p3), %v938_v32 }
 0x144   : > { %v1237_v17 = vpop.f32.mrb[12].mxu0  ;;  %v1261_v18 = vpop.f32.mrb[12].mxu1  ;;  %829 = sbr.rel (!%p1456_p3) target bundleno = 340 (0x154), region = 40  ;;  %v942_v34 = vld [vmem:[%s1688_s3 + $0x48] sm:$0xff] (%p1456_p3)  ;;  %969 = vst [vmem:[%s1731_s6 + $0x210] sm:$0xff] (%p1456_p3), %v968_v47  ;;  %971 = vst [vmem:[%s1731_s6 + $0x228] sm:$0xff] (%p1456_p3), %v970_v48 }
 0x145   : > { %804 = vst [vmem:[%s1688_s3 + $0x68] sm:$0xff] %v1237_v17  ;;  %820 = vst [vmem:[%s1688_s3 + $0xe8] sm:$0xff] %v1261_v18  ;;  %v593_v19 = vpop.f32.mrb[13].mxu0  ;;  %v673_v20 = vpop.f32.mrb[13].mxu1  ;;  %v940_v33 = vld [vmem:[%s1688_s3 + $0x40] sm:$0xff] (%p1456_p3)  ;;  %v974_v50 = vld [vmem:[%s1688_s3 + $0xc8] sm:$0xff] (%p1456_p3) }
 0x146   : > { %803 = vst [vmem:[%s1688_s3 + $0x60] sm:$0xff] %v593_v19  ;;  %819 = vst [vmem:[%s1688_s3 + $0xe0] sm:$0xff] %v673_v20  ;;  %v972_v49 = vld [vmem:[%s1688_s3 + $0xc0] sm:$0xff] (%p1456_p3) }
 0x147   : > { %941 = vst [vmem:[%s1731_s6 + $0xc0] sm:$0xff] (%p1456_p3), %v940_v33  ;;  %943 = vst [vmem:[%s1731_s6 + $0xd8] sm:$0xff] (%p1456_p3), %v942_v34 }
 0x148   : > { %v1240_v21 = vpop.f32.mrb[14].mxu0  ;;  %v1264_v22 = vpop.f32.mrb[14].mxu1  ;;  %v946_v36 = vld [vmem:[%s1688_s3 + $0x58] sm:$0xff] (%p1456_p3)  ;;  %973 = vst [vmem:[%s1731_s6 + $0x240] sm:$0xff] (%p1456_p3), %v972_v49  ;;  %975 = vst [vmem:[%s1731_s6 + $0x258] sm:$0xff] (%p1456_p3), %v974_v50 }
 0x149   : > { %806 = vst [vmem:[%s1688_s3 + $0x78] sm:$0xff] %v1240_v21  ;;  %822 = vst [vmem:[%s1688_s3 + $0xf8] sm:$0xff] %v1264_v22  ;;  %v603_v23 = vpop.f32.mrb[15].mxu0  ;;  %v683_v24 = vpop.f32.mrb[15].mxu1  ;;  %v944_v35 = vld [vmem:[%s1688_s3 + $0x50] sm:$0xff] (%p1456_p3)  ;;  %v978_v52 = vld [vmem:[%s1688_s3 + $0xd8] sm:$0xff] (%p1456_p3) }
 0x14a   : > { %805 = vst [vmem:[%s1688_s3 + $0x70] sm:$0xff] %v603_v23  ;;  %821 = vst [vmem:[%s1688_s3 + $0xf0] sm:$0xff] %v683_v24  ;;  %v976_v51 = vld [vmem:[%s1688_s3 + $0xd0] sm:$0xff] (%p1456_p3) }
 0x14b   : > { %945 = vst [vmem:[%s1731_s6 + $0xf0] sm:$0xff] %v944_v35  ;;  %947 = vst [vmem:[%s1731_s6 + $0x108] sm:$0xff] %v946_v36 }
 0x14c   : > { %v950_v38 = vld [vmem:[%s1688_s3 + $0x68] sm:$0xff]  ;;  %977 = vst [vmem:[%s1731_s6 + $0x270] sm:$0xff] %v976_v51  ;;  %979 = vst [vmem:[%s1731_s6 + $0x288] sm:$0xff] %v978_v52 }
 0x14d   : > { %v948_v37 = vld [vmem:[%s1688_s3 + $0x60] sm:$0xff]  ;;  %951 = vst [vmem:[%s1731_s6 + $0x138] sm:$0xff] %v950_v38  ;;  %v982_v54 = vld [vmem:[%s1688_s3 + $0xe8] sm:$0xff] }
 0x14e   : > { %949 = vst [vmem:[%s1731_s6 + $0x120] sm:$0xff] %v948_v37  ;;  %v980_v53 = vld [vmem:[%s1688_s3 + $0xe0] sm:$0xff]  ;;  %983 = vst [vmem:[%s1731_s6 + $0x2b8] sm:$0xff] %v982_v54 }
 0x14f   : > { %981 = vst [vmem:[%s1731_s6 + $0x2a0] sm:$0xff] %v980_v53 }
 0x150   : > { %v954_v40 = vld [vmem:[%s1688_s3 + $0x78] sm:$0xff] }
 0x151   : > { %v952_v39 = vld [vmem:[%s1688_s3 + $0x70] sm:$0xff]  ;;  %955 = vst [vmem:[%s1731_s6 + $0x168] sm:$0xff] %v954_v40  ;;  %v986_v56 = vld [vmem:[%s1688_s3 + $0xf8] sm:$0xff] }
 0x152   : > { %953 = vst [vmem:[%s1731_s6 + $0x150] sm:$0xff] %v952_v39  ;;  %v984_v55 = vld [vmem:[%s1688_s3 + $0xf0] sm:$0xff]  ;;  %987 = vst [vmem:[%s1731_s6 + $0x2e8] sm:$0xff] %v986_v56 }
 0x153   : > { %985 = vst [vmem:[%s1731_s6 + $0x2d0] sm:$0xff] %v984_v55 }
 0x154 PF: > { %s12_s13 = sadd.s32 1, %s1407_s13   ;;  %s1815_s9 = smov %s1395_s10 }
 0x155   : > { %p9_p9 = scmp.ge.s32.totalorder %s12_s13, 5   ;;  %s1816_s10 = smov %s1465_s19 }
 0x156   : > { %s1817_s11 = smov %s1403_s12  ;;  %s1818_s12 = smov %s1820_s15 }
 0x157   :  { %11 = sbr.rel (!%p9_p9) target bundleno = 3 (0x3), region = 107 }

// kernel: attention_forward.5
= control target key start
LH: loop header
LB: loop body
LE: loop exit
PB: predicated region body
PF: predicated region fallthrough
CT: control target
= control target key end

     0   :  { %vm15_vm0 = vcmask 261120   ;;  %v582_v3 = vmov 0.0   ;;  %s898_s1 = inlined_call_operand.vmem [shape: f32[32,128], index: 1, kind: input, shape index: {}]   ;;  %s899_s0 = inlined_call_operand.vmem [shape: f32[256,128], index: 0, kind: input, shape index: {}]   ;;  %s900_s2 = inlined_call_operand.vmem [shape: f32[256,32], index: 2, kind: output, shape index: {}]  }
   0x1   :  { %v112_v0 = vld [vmem:[%s898_s1] sm:$0xff]  ;;  %v113_v1 = vld [vmem:[%s898_s1 + $0x8] sm:$0xff]  ;;  %v114_v2 = vld [vmem:[%s898_s1 + $0x10] sm:$0xff]  ;;  %17 = vst.msk [vmem:[#allocation2 + $0x8] sm:$0xff] %vm15_vm0, %v582_v3 }
   0x2   :  { %16 = vst.msk [vmem:[#allocation2] sm:$0xff] %vm15_vm0, %v582_v3  ;;  %18 = vst.msk [vmem:[#allocation2 + $0x10] sm:$0xff] %vm15_vm0, %v582_v3  ;;  %v569_v4 = vpack.c.bf16 %v113_v1, %v112_v0  ;;  %v115_v5 = vld [vmem:[%s898_s1 + $0x18] sm:$0xff]  ;;  %v80_v6 = vld [vmem:[%s899_s0] sm:$0xff] }
   0x3   :  { %19 = vst.msk [vmem:[#allocation2 + $0x18] sm:$0xff] %vm15_vm0, %v582_v3  ;;  %20 = vst.msk [vmem:[#allocation2 + $0x20] sm:$0xff] %vm15_vm0, %v582_v3  ;;  %v96_v7 = vld [vmem:[%s899_s0 + $0x80] sm:$0xff]  ;;  %v573_v8 = vpack.c.bf16 %v115_v5, %v114_v2  ;;  %521 = vmatprep.mubr.f32.mxu0 %v80_v6  ;;  %v81_v9 = vld [vmem:[%s899_s0 + $0x8] sm:$0xff] }
   0x4   :  { %21 = vst.msk [vmem:[#allocation2 + $0x28] sm:$0xff] %vm15_vm0, %v582_v3  ;;  %22 = vst.msk [vmem:[#allocation2 + $0x30] sm:$0xff] %vm15_vm0, %v582_v3  ;;  %545 = vmatprep.mubr.f32.mxu1 %v96_v7  ;;  %570 = vmatprep.subr.bf16.mxu0 %v569_v4  ;;  %v97_v10 = vld [vmem:[%s899_s0 + $0x88] sm:$0xff]  ;;  %v82_v11 = vld [vmem:[%s899_s0 + $0x10] sm:$0xff] }
   0x5   :  { %23 = vst.msk [vmem:[#allocation2 + $0x38] sm:$0xff] %vm15_vm0, %v582_v3  ;;  %24 = vst.msk [vmem:[#allocation2 + $0x40] sm:$0xff] %vm15_vm0, %v582_v3  ;;  %577 = vmatprep.subr.bf16.mxu1 %v569_v4  ;;  %572 = vmatpush3.bf16.xpose.msra.mxu0 %v569_v4  ;;  %v98_v12 = vld [vmem:[%s899_s0 + $0x90] sm:$0xff]  ;;  %v83_v13 = vld [vmem:[%s899_s0 + $0x18] sm:$0xff] }
   0x6   :  { %25 = vst.msk [vmem:[#allocation2 + $0x48] sm:$0xff] %vm15_vm0, %v582_v3  ;;  %26 = vst.msk [vmem:[#allocation2 + $0x50] sm:$0xff] %vm15_vm0, %v582_v3  ;;  %579 = vmatpush3.bf16.xpose.msra.mxu1 %v569_v4  ;;  %574 = vmatprep.subr.bf16.mxu0 %v573_v8  ;;  %v99_v14 = vld [vmem:[%s899_s0 + $0x98] sm:$0xff]  ;;  %v84_v15 = vld [vmem:[%s899_s0 + $0x20] sm:$0xff] }
   0x7   :  { %27 = vst.msk [vmem:[#allocation2 + $0x58] sm:$0xff] %vm15_vm0, %v582_v3  ;;  %28 = vst.msk [vmem:[#allocation2 + $0x60] sm:$0xff] %vm15_vm0, %v582_v3  ;;  %578 = vmatprep.subr.bf16.mxu1 %v573_v8  ;;  %v100_v16 = vld [vmem:[%s899_s0 + $0xa0] sm:$0xff]  ;;  %v85_v17 = vld [vmem:[%s899_s0 + $0x28] sm:$0xff] }
   0x8   :  { %29 = vst.msk [vmem:[#allocation2 + $0x68] sm:$0xff] %vm15_vm0, %v582_v3  ;;  %30 = vst.msk [vmem:[#allocation2 + $0x70] sm:$0xff] %vm15_vm0, %v582_v3  ;;  %v101_v18 = vld [vmem:[%s899_s0 + $0xa8] sm:$0xff]  ;;  %v86_v19 = vld [vmem:[%s899_s0 + $0x30] sm:$0xff] }
   0x9   :  { %31 = vst.msk [vmem:[#allocation2 + $0x78] sm:$0xff] %vm15_vm0, %v582_v3  ;;  %32 = vst.msk [vmem:[#allocation2 + $0x80] sm:$0xff] %vm15_vm0, %v582_v3  ;;  %v102_v20 = vld [vmem:[%s899_s0 + $0xb0] sm:$0xff]  ;;  %v87_v21 = vld [vmem:[%s899_s0 + $0x38] sm:$0xff] }
   0xa   :  { %33 = vst.msk [vmem:[#allocation2 + $0x88] sm:$0xff] %vm15_vm0, %v582_v3  ;;  %34 = vst.msk [vmem:[#allocation2 + $0x90] sm:$0xff] %vm15_vm0, %v582_v3  ;;  %v103_v22 = vld [vmem:[%s899_s0 + $0xb8] sm:$0xff]  ;;  %v88_v23 = vld [vmem:[%s899_s0 + $0x40] sm:$0xff] }
   0xb   :  { %35 = vst.msk [vmem:[#allocation2 + $0x98] sm:$0xff] %vm15_vm0, %v582_v3  ;;  %36 = vst.msk [vmem:[#allocation2 + $0xa0] sm:$0xff] %vm15_vm0, %v582_v3  ;;  %v104_v24 = vld [vmem:[%s899_s0 + $0xc0] sm:$0xff]  ;;  %v89_v25 = vld [vmem:[%s899_s0 + $0x48] sm:$0xff] }
   0xc   :  { %37 = vst.msk [vmem:[#allocation2 + $0xa8] sm:$0xff] %vm15_vm0, %v582_v3  ;;  %38 = vst.msk [vmem:[#allocation2 + $0xb0] sm:$0xff] %vm15_vm0, %v582_v3  ;;  %v105_v26 = vld [vmem:[%s899_s0 + $0xc8] sm:$0xff]  ;;  %v90_v27 = vld [vmem:[%s899_s0 + $0x50] sm:$0xff] }
   0xd   :  { %39 = vst.msk [vmem:[#allocation2 + $0xb8] sm:$0xff] %vm15_vm0, %v582_v3  ;;  %40 = vst.msk [vmem:[#allocation2 + $0xc0] sm:$0xff] %vm15_vm0, %v582_v3  ;;  %576 = vmatpush3.bf16.xpose.msra.mxu0 %v573_v8  ;;  %v106_v28 = vld [vmem:[%s899_s0 + $0xd0] sm:$0xff]  ;;  %v91_v29 = vld [vmem:[%s899_s0 + $0x58] sm:$0xff] }
   0xe   :  { %41 = vst.msk [vmem:[#allocation2 + $0xc8] sm:$0xff] %vm15_vm0, %v582_v3  ;;  %42 = vst.msk [vmem:[#allocation2 + $0xd0] sm:$0xff] %vm15_vm0, %v582_v3  ;;  %580 = vmatpush3.bf16.xpose.msra.mxu1 %v573_v8  ;;  %v107_v30 = vld [vmem:[%s899_s0 + $0xd8] sm:$0xff]  ;;  %v92_v31 = vld [vmem:[%s899_s0 + $0x60] sm:$0xff] }
   0xf   :  { %43 = vst.msk [vmem:[#allocation2 + $0xd8] sm:$0xff] %vm15_vm0, %v582_v3  ;;  %44 = vst.msk [vmem:[#allocation2 + $0xe0] sm:$0xff] %vm15_vm0, %v582_v3  ;;  %v108_v32 = vld [vmem:[%s899_s0 + $0xe0] sm:$0xff]  ;;  %v93_v33 = vld [vmem:[%s899_s0 + $0x68] sm:$0xff] }
  0x10   :  { %45 = vst.msk [vmem:[#allocation2 + $0xe8] sm:$0xff] %vm15_vm0, %v582_v3  ;;  %46 = vst.msk [vmem:[#allocation2 + $0xf0] sm:$0xff] %vm15_vm0, %v582_v3  ;;  %v109_v34 = vld [vmem:[%s899_s0 + $0xe8] sm:$0xff]  ;;  %v94_v35 = vld [vmem:[%s899_s0 + $0x70] sm:$0xff] }
  0x11   :  { %47 = vst.msk [vmem:[#allocation2 + $0xf8] sm:$0xff] %vm15_vm0, %v582_v3  ;;  %v110_v36 = vld [vmem:[%s899_s0 + $0xf0] sm:$0xff]  ;;  %v95_v37 = vld [vmem:[%s899_s0 + $0x78] sm:$0xff]  ;;  %v49_v39 = vld [vmem:[#allocation2 + $0x8] sm:$0xff] }
  0x12   :  { %v111_v38 = vld [vmem:[%s899_s0 + $0xf8] sm:$0xff]  ;;  %v65_v40 = vld [vmem:[#allocation2 + $0x88] sm:$0xff]  ;;  %v48_v41 = vld [vmem:[#allocation2] sm:$0xff] }
  0x13   :  { %v64_v42 = vld [vmem:[#allocation2 + $0x80] sm:$0xff]  ;;  %v51_v51 = vld [vmem:[#allocation2 + $0x18] sm:$0xff]  ;;  %v50_v53 = vld [vmem:[#allocation2 + $0x10] sm:$0xff] }
  0x14   :  { %522 = vmatmul.mubr.f32.vlgmr.msra.gmra.mrb[0].mxu0 %v81_v9  ;;  %v67_v52 = vld [vmem:[#allocation2 + $0x98] sm:$0xff]  ;;  %v66_v54 = vld [vmem:[#allocation2 + $0x90] sm:$0xff]  ;;  %v53_v63 = vld [vmem:[#allocation2 + $0x28] sm:$0xff] }
  0x15   :  { %546 = vmatmul.mubr.f32.vlgmr.msra.gmra.mrb[0].mxu1 %v97_v10  ;;  %524 = vmatprep.mubr.f32.mxu0 %v82_v11  ;;  %v69_v0 = vld [vmem:[#allocation2 + $0xa8] sm:$0xff]  ;;  %v52_v1 = vld [vmem:[#allocation2 + $0x20] sm:$0xff]  ;;  %v55_v9 = vld [vmem:[#allocation2 + $0x38] sm:$0xff] }
  0x16   :  { %548 = vmatprep.mubr.f32.mxu1 %v98_v12  ;;  %v68_v2 = vld [vmem:[#allocation2 + $0xa0] sm:$0xff]  ;;  %v71_v10 = vld [vmem:[#allocation2 + $0xb8] sm:$0xff] }
  0x18   :  { %525 = vmatmul.mubr.f32.gmra.mrb[2].mxu0 %v83_v13 }
  0x19   :  { %549 = vmatmul.mubr.f32.gmra.mrb[2].mxu1 %v99_v14  ;;  %527 = vmatprep.mubr.f32.mxu0 %v84_v15  ;;  %v54_v15 = vld [vmem:[#allocation2 + $0x30] sm:$0xff] }
  0x1a   :  { %551 = vmatprep.mubr.f32.mxu1 %v100_v16 }
  0x1c   :  { %528 = vmatmul.mubr.f32.gmra.mrb[4].mxu0 %v85_v17 }
  0x1d   :  { %552 = vmatmul.mubr.f32.gmra.mrb[4].mxu1 %v101_v18  ;;  %530 = vmatprep.mubr.f32.mxu0 %v86_v19  ;;  %v70_v18 = vld [vmem:[#allocation2 + $0xb0] sm:$0xff] }
  0x1e   :  { %554 = vmatprep.mubr.f32.mxu1 %v102_v20 }
  0x20   :  { %531 = vmatmul.mubr.f32.gmra.mrb[6].mxu0 %v87_v21 }
  0x21   :  { %555 = vmatmul.mubr.f32.gmra.mrb[6].mxu1 %v103_v22  ;;  %533 = vmatprep.mubr.f32.mxu0 %v88_v23 }
  0x22   :  { %557 = vmatprep.mubr.f32.mxu1 %v104_v24 }
  0x24   :  { %534 = vmatmul.mubr.f32.gmra.mrb[8].mxu0 %v89_v25  ;;  %v57_v25 = vld [vmem:[#allocation2 + $0x48] sm:$0xff] }
  0x25   :  { %558 = vmatmul.mubr.f32.gmra.mrb[8].mxu1 %v105_v26  ;;  %536 = vmatprep.mubr.f32.mxu0 %v90_v27  ;;  %v73_v26 = vld [vmem:[#allocation2 + $0xc8] sm:$0xff] }
  0x26   :  { %560 = vmatprep.mubr.f32.mxu1 %v106_v28 }
  0x28   :  { %537 = vmatmul.mubr.f32.gmra.mrb[10].mxu0 %v91_v29 }
  0x29   :  { %561 = vmatmul.mubr.f32.gmra.mrb[10].mxu1 %v107_v30  ;;  %539 = vmatprep.mubr.f32.mxu0 %v92_v31  ;;  %v56_v31 = vld [vmem:[#allocation2 + $0x40] sm:$0xff] }
  0x2a   :  { %563 = vmatprep.mubr.f32.mxu1 %v108_v32 }
  0x2c   :  { %540 = vmatmul.mubr.f32.gmra.mrb[12].mxu0 %v93_v33 }
  0x2d   :  { %564 = vmatmul.mubr.f32.gmra.mrb[12].mxu1 %v109_v34  ;;  %542 = vmatprep.mubr.f32.mxu0 %v94_v35  ;;  %v72_v34 = vld [vmem:[#allocation2 + $0xc0] sm:$0xff] }
  0x2e   :  { %566 = vmatprep.mubr.f32.mxu1 %v110_v36 }
  0x30   :  { %543 = vmatmul.mubr.f32.gmra.mrb[14].mxu0 %v95_v37 }
  0x31   :  { %567 = vmatmul.mubr.f32.gmra.mrb[14].mxu1 %v111_v38 }
  0xe7   :  { %v523_v43 = vpop.f32.mrb[0].mxu0 }
  0xe8   :  { %v547_v44 = vpop.f32.mrb[0].mxu1  ;;  %v342_v45 = vadd.f32 %v523_v43, %v49_v39  ;;  %v182_v47 = vpop.f32.mrb[1].mxu0 }
  0xe9   :  { %v358_v46 = vadd.f32 %v547_v44, %v65_v40  ;;  %v262_v48 = vpop.f32.mrb[1].mxu1  ;;  %v341_v49 = vadd.f32 %v182_v47, %v48_v41  ;;  %v59_v41 = vld [vmem:[#allocation2 + $0x58] sm:$0xff]  ;;  %v58_v47 = vld [vmem:[#allocation2 + $0x50] sm:$0xff] }
  0xea   :  { %v357_v50 = vadd.f32 %v262_v48, %v64_v42  ;;  %375 = vst.msk [vmem:[#allocation2 + $0x8] sm:$0xff] %vm15_vm0, %v342_v45  ;;  %v75_v42 = vld [vmem:[#allocation2 + $0xd8] sm:$0xff] }
  0xeb   :  { %391 = vst.msk [vmem:[#allocation2 + $0x88] sm:$0xff] %vm15_vm0, %v358_v46  ;;  %374 = vst.msk [vmem:[#allocation2] sm:$0xff] %vm15_vm0, %v341_v49  ;;  %v526_v55 = vpop.f32.mrb[2].mxu0 }
  0xec   :  { %390 = vst.msk [vmem:[#allocation2 + $0x80] sm:$0xff] %vm15_vm0, %v357_v50  ;;  %v550_v56 = vpop.f32.mrb[2].mxu1  ;;  %v344_v57 = vadd.f32 %v526_v55, %v51_v51  ;;  %v192_v59 = vpop.f32.mrb[3].mxu0  ;;  %v74_v50 = vld [vmem:[#allocation2 + $0xd0] sm:$0xff] }
  0xed   :  { %v360_v58 = vadd.f32 %v550_v56, %v67_v52  ;;  %v272_v60 = vpop.f32.mrb[3].mxu1  ;;  %v343_v61 = vadd.f32 %v192_v59, %v50_v53 }
  0xee   :  { %v359_v62 = vadd.f32 %v272_v60, %v66_v54  ;;  %377 = vst.msk [vmem:[#allocation2 + $0x18] sm:$0xff] %vm15_vm0, %v344_v57  ;;  %v61_v57 = vld [vmem:[#allocation2 + $0x68] sm:$0xff] }
  0xef   :  { %393 = vst.msk [vmem:[#allocation2 + $0x98] sm:$0xff] %vm15_vm0, %v360_v58  ;;  %376 = vst.msk [vmem:[#allocation2 + $0x10] sm:$0xff] %vm15_vm0, %v343_v61  ;;  %v529_v3 = vpop.f32.mrb[4].mxu0  ;;  %v77_v58 = vld [vmem:[#allocation2 + $0xe8] sm:$0xff] }
  0xf0   :  { %392 = vst.msk [vmem:[#allocation2 + $0x90] sm:$0xff] %vm15_vm0, %v359_v62  ;;  %v553_v4 = vpop.f32.mrb[4].mxu1  ;;  %v346_v5 = vadd.f32 %v529_v3, %v53_v63  ;;  %v202_v7 = vpop.f32.mrb[5].mxu0  ;;  %v60_v63 = vld [vmem:[#allocation2 + $0x60] sm:$0xff] }
  0xf1   :  { %v362_v6 = vadd.f32 %v553_v4, %v69_v0  ;;  %v282_v8 = vpop.f32.mrb[5].mxu1  ;;  %v410_v11 = vld [vmem:[#allocation2 + $0x8] sm:$0xff]  ;;  %v345_v13 = vadd.f32 %v202_v7, %v52_v1 }
  0xf2   :  { %v426_v12 = vld [vmem:[#allocation2 + $0x88] sm:$0xff]  ;;  %v361_v14 = vadd.f32 %v282_v8, %v68_v2  ;;  %442 = vst.msk [vmem:[%s900_s2 + $0x8] sm:$0xff] %vm15_vm0, %v410_v11  ;;  %v409_v16 = vld [vmem:[#allocation2] sm:$0xff]  ;;  %379 = vst.msk [vmem:[#allocation2 + $0x28] sm:$0xff] %vm15_vm0, %v346_v5 }
  0xf3   :  { %458 = vst.msk [vmem:[%s900_s2 + $0x88] sm:$0xff] %vm15_vm0, %v426_v12  ;;  %v425_v17 = vld [vmem:[#allocation2 + $0x80] sm:$0xff]  ;;  %395 = vst.msk [vmem:[#allocation2 + $0xa8] sm:$0xff] %vm15_vm0, %v362_v6  ;;  %v532_v19 = vpop.f32.mrb[6].mxu0 }
  0xf4   :  { %441 = vst.msk [vmem:[%s900_s2] sm:$0xff] %vm15_vm0, %v409_v16  ;;  %457 = vst.msk [vmem:[%s900_s2 + $0x80] sm:$0xff] %vm15_vm0, %v425_v17  ;;  %v556_v20 = vpop.f32.mrb[6].mxu1  ;;  %v348_v21 = vadd.f32 %v532_v19, %v55_v9  ;;  %v212_v23 = vpop.f32.mrb[7].mxu0  ;;  %v76_v2 = vld [vmem:[#allocation2 + $0xe0] sm:$0xff]  ;;  %v63_v9 = vld [vmem:[#allocation2 + $0x78] sm:$0xff] }
  0xf5   :  { %378 = vst.msk [vmem:[#allocation2 + $0x20] sm:$0xff] %vm15_vm0, %v345_v13  ;;  %394 = vst.msk [vmem:[#allocation2 + $0xa0] sm:$0xff] %vm15_vm0, %v361_v14  ;;  %v364_v22 = vadd.f32 %v556_v20, %v71_v10  ;;  %v292_v24 = vpop.f32.mrb[7].mxu1  ;;  %v412_v27 = vld [vmem:[#allocation2 + $0x18] sm:$0xff]  ;;  %v347_v29 = vadd.f32 %v212_v23, %v54_v15  ;;  %v62_v15 = vld [vmem:[#allocation2 + $0x70] sm:$0xff] }
  0xf6   :  { %v428_v28 = vld [vmem:[#allocation2 + $0x98] sm:$0xff]  ;;  %v363_v30 = vadd.f32 %v292_v24, %v70_v18  ;;  %444 = vst.msk [vmem:[%s900_s2 + $0x18] sm:$0xff] %vm15_vm0, %v412_v27  ;;  %v411_v32 = vld [vmem:[#allocation2 + $0x10] sm:$0xff]  ;;  %381 = vst.msk [vmem:[#allocation2 + $0x38] sm:$0xff] %vm15_vm0, %v348_v21 }
  0xf7   :  { %460 = vst.msk [vmem:[%s900_s2 + $0x98] sm:$0xff] %vm15_vm0, %v428_v28  ;;  %v427_v33 = vld [vmem:[#allocation2 + $0x90] sm:$0xff]  ;;  %397 = vst.msk [vmem:[#allocation2 + $0xb8] sm:$0xff] %vm15_vm0, %v364_v22  ;;  %v535_v35 = vpop.f32.mrb[8].mxu0  ;;  %v79_v10 = vld [vmem:[#allocation2 + $0xf8] sm:$0xff] }
  0xf8   :  { %443 = vst.msk [vmem:[%s900_s2 + $0x10] sm:$0xff] %vm15_vm0, %v411_v32  ;;  %459 = vst.msk [vmem:[%s900_s2 + $0x90] sm:$0xff] %vm15_vm0, %v427_v33  ;;  %v559_v36 = vpop.f32.mrb[8].mxu1  ;;  %v350_v37 = vadd.f32 %v535_v35, %v57_v25  ;;  %v222_v39 = vpop.f32.mrb[9].mxu0  ;;  %v78_v18 = vld [vmem:[#allocation2 + $0xf0] sm:$0xff] }
  0xf9   :  { %380 = vst.msk [vmem:[#allocation2 + $0x30] sm:$0xff] %vm15_vm0, %v347_v29  ;;  %396 = vst.msk [vmem:[#allocation2 + $0xb0] sm:$0xff] %vm15_vm0, %v363_v30  ;;  %v366_v38 = vadd.f32 %v559_v36, %v73_v26  ;;  %v302_v40 = vpop.f32.mrb[9].mxu1  ;;  %v414_v43 = vld [vmem:[#allocation2 + $0x28] sm:$0xff]  ;;  %v349_v45 = vadd.f32 %v222_v39, %v56_v31 }
  0xfa   :  { %v430_v44 = vld [vmem:[#allocation2 + $0xa8] sm:$0xff]  ;;  %v365_v46 = vadd.f32 %v302_v40, %v72_v34  ;;  %446 = vst.msk [vmem:[%s900_s2 + $0x28] sm:$0xff] %vm15_vm0, %v414_v43  ;;  %383 = vst.msk [vmem:[#allocation2 + $0x48] sm:$0xff] %vm15_vm0, %v350_v37 }
  0xfb   :  { %462 = vst.msk [vmem:[%s900_s2 + $0xa8] sm:$0xff] %vm15_vm0, %v430_v44  ;;  %399 = vst.msk [vmem:[#allocation2 + $0xc8] sm:$0xff] %vm15_vm0, %v366_v38  ;;  %v538_v51 = vpop.f32.mrb[10].mxu0 }
  0xfc   :  { %v413_v48 = vld [vmem:[#allocation2 + $0x20] sm:$0xff]  ;;  %382 = vst.msk [vmem:[#allocation2 + $0x40] sm:$0xff] %vm15_vm0, %v349_v45  ;;  %398 = vst.msk [vmem:[#allocation2 + $0xc0] sm:$0xff] %vm15_vm0, %v365_v46  ;;  %v562_v52 = vpop.f32.mrb[10].mxu1  ;;  %v352_v53 = vadd.f32 %v538_v51, %v59_v41  ;;  %v232_v55 = vpop.f32.mrb[11].mxu0 }
  0xfd   :  { %v429_v49 = vld [vmem:[#allocation2 + $0xa0] sm:$0xff]  ;;  %445 = vst.msk [vmem:[%s900_s2 + $0x20] sm:$0xff] %vm15_vm0, %v413_v48  ;;  %v368_v54 = vadd.f32 %v562_v52, %v75_v42  ;;  %v312_v56 = vpop.f32.mrb[11].mxu1  ;;  %v416_v59 = vld [vmem:[#allocation2 + $0x38] sm:$0xff]  ;;  %v351_v61 = vadd.f32 %v232_v55, %v58_v47 }
  0xfe   :  { %461 = vst.msk [vmem:[%s900_s2 + $0xa0] sm:$0xff] %vm15_vm0, %v429_v49  ;;  %v432_v60 = vld [vmem:[#allocation2 + $0xb8] sm:$0xff]  ;;  %v367_v62 = vadd.f32 %v312_v56, %v74_v50  ;;  %448 = vst.msk [vmem:[%s900_s2 + $0x38] sm:$0xff] %vm15_vm0, %v416_v59 }
  0xff   :  { %464 = vst.msk [vmem:[%s900_s2 + $0xb8] sm:$0xff] %vm15_vm0, %v432_v60  ;;  %385 = vst.msk [vmem:[#allocation2 + $0x58] sm:$0xff] %vm15_vm0, %v352_v53  ;;  %v541_v3 = vpop.f32.mrb[12].mxu0 }
 0x100   :  { %v415_v0 = vld [vmem:[#allocation2 + $0x30] sm:$0xff]  ;;  %401 = vst.msk [vmem:[#allocation2 + $0xd8] sm:$0xff] %vm15_vm0, %v368_v54  ;;  %384 = vst.msk [vmem:[#allocation2 + $0x50] sm:$0xff] %vm15_vm0, %v351_v61  ;;  %v565_v4 = vpop.f32.mrb[12].mxu1  ;;  %v354_v5 = vadd.f32 %v541_v3, %v61_v57  ;;  %v242_v7 = vpop.f32.mrb[13].mxu0 }
 0x101   :  { %v431_v1 = vld [vmem:[#allocation2 + $0xb0] sm:$0xff]  ;;  %447 = vst.msk [vmem:[%s900_s2 + $0x30] sm:$0xff] %vm15_vm0, %v415_v0  ;;  %400 = vst.msk [vmem:[#allocation2 + $0xd0] sm:$0xff] %vm15_vm0, %v367_v62  ;;  %v370_v6 = vadd.f32 %v565_v4, %v77_v58  ;;  %v322_v8 = vpop.f32.mrb[13].mxu1  ;;  %v418_v11 = vld [vmem:[#allocation2 + $0x48] sm:$0xff]  ;;  %v353_v13 = vadd.f32 %v242_v7, %v60_v63 }
 0x102   :  { %463 = vst.msk [vmem:[%s900_s2 + $0xb0] sm:$0xff] %vm15_vm0, %v431_v1  ;;  %v434_v12 = vld [vmem:[#allocation2 + $0xc8] sm:$0xff]  ;;  %v369_v14 = vadd.f32 %v322_v8, %v76_v2  ;;  %450 = vst.msk [vmem:[%s900_s2 + $0x48] sm:$0xff] %vm15_vm0, %v418_v11 }
 0x103   :  { %466 = vst.msk [vmem:[%s900_s2 + $0xc8] sm:$0xff] %vm15_vm0, %v434_v12  ;;  %v417_v16 = vld [vmem:[#allocation2 + $0x40] sm:$0xff]  ;;  %387 = vst.msk [vmem:[#allocation2 + $0x68] sm:$0xff] %vm15_vm0, %v354_v5  ;;  %v544_v19 = vpop.f32.mrb[14].mxu0 }
 0x104   :  { %v433_v17 = vld [vmem:[#allocation2 + $0xc0] sm:$0xff]  ;;  %403 = vst.msk [vmem:[#allocation2 + $0xe8] sm:$0xff] %vm15_vm0, %v370_v6  ;;  %449 = vst.msk [vmem:[%s900_s2 + $0x40] sm:$0xff] %vm15_vm0, %v417_v16  ;;  %v568_v20 = vpop.f32.mrb[14].mxu1  ;;  %v356_v21 = vadd.f32 %v544_v19, %v63_v9  ;;  %v252_v23 = vpop.f32.mrb[15].mxu0 }
 0x105   :  { %465 = vst.msk [vmem:[%s900_s2 + $0xc0] sm:$0xff] %vm15_vm0, %v433_v17  ;;  %386 = vst.msk [vmem:[#allocation2 + $0x60] sm:$0xff] %vm15_vm0, %v353_v13  ;;  %v372_v22 = vadd.f32 %v568_v20, %v79_v10  ;;  %v332_v24 = vpop.f32.mrb[15].mxu1  ;;  %v355_v27 = vadd.f32 %v252_v23, %v62_v15 }
 0x106   :  { %402 = vst.msk [vmem:[#allocation2 + $0xe0] sm:$0xff] %vm15_vm0, %v369_v14  ;;  %v420_v25 = vld [vmem:[#allocation2 + $0x58] sm:$0xff]  ;;  %v371_v28 = vadd.f32 %v332_v24, %v78_v18  ;;  %389 = vst.msk [vmem:[#allocation2 + $0x78] sm:$0xff] %vm15_vm0, %v356_v21 }
 0x107   :  { %v436_v26 = vld [vmem:[#allocation2 + $0xd8] sm:$0xff]  ;;  %452 = vst.msk [vmem:[%s900_s2 + $0x58] sm:$0xff] %vm15_vm0, %v420_v25  ;;  %v419_v29 = vld [vmem:[#allocation2 + $0x50] sm:$0xff]  ;;  %405 = vst.msk [vmem:[#allocation2 + $0xf8] sm:$0xff] %vm15_vm0, %v372_v22 }
 0x108   :  { %468 = vst.msk [vmem:[%s900_s2 + $0xd8] sm:$0xff] %vm15_vm0, %v436_v26  ;;  %v435_v30 = vld [vmem:[#allocation2 + $0xd0] sm:$0xff]  ;;  %451 = vst.msk [vmem:[%s900_s2 + $0x50] sm:$0xff] %vm15_vm0, %v419_v29 }
 0x109   :  { %467 = vst.msk [vmem:[%s900_s2 + $0xd0] sm:$0xff] %vm15_vm0, %v435_v30  ;;  %388 = vst.msk [vmem:[#allocation2 + $0x70] sm:$0xff] %vm15_vm0, %v355_v27 }
 0x10a   :  { %404 = vst.msk [vmem:[#allocation2 + $0xf0] sm:$0xff] %vm15_vm0, %v371_v28  ;;  %v422_v31 = vld [vmem:[#allocation2 + $0x68] sm:$0xff] }
 0x10b   :  { %v438_v32 = vld [vmem:[#allocation2 + $0xe8] sm:$0xff]  ;;  %454 = vst.msk [vmem:[%s900_s2 + $0x68] sm:$0xff] %vm15_vm0, %v422_v31 }
 0x10c   :  { %470 = vst.msk [vmem:[%s900_s2 + $0xe8] sm:$0xff] %vm15_vm0, %v438_v32  ;;  %v421_v33 = vld [vmem:[#allocation2 + $0x60] sm:$0xff] }
 0x10d   :  { %v437_v34 = vld [vmem:[#allocation2 + $0xe0] sm:$0xff]  ;;  %453 = vst.msk [vmem:[%s900_s2 + $0x60] sm:$0xff] %vm15_vm0, %v421_v33  ;;  %v424_v35 = vld [vmem:[#allocation2 + $0x78] sm:$0xff] }
 0x10e   :  { %469 = vst.msk [vmem:[%s900_s2 + $0xe0] sm:$0xff] %vm15_vm0, %v437_v34  ;;  %v440_v36 = vld [vmem:[#allocation2 + $0xf8] sm:$0xff]  ;;  %456 = vst.msk [vmem:[%s900_s2 + $0x78] sm:$0xff] %vm15_vm0, %v424_v35 }
 0x10f   :  { %472 = vst.msk [vmem:[%s900_s2 + $0xf8] sm:$0xff] %vm15_vm0, %v440_v36 }
 0x110   :  { %v423_v37 = vld [vmem:[#allocation2 + $0x70] sm:$0xff] }
 0x111   :  { %v439_v38 = vld [vmem:[#allocation2 + $0xf0] sm:$0xff]  ;;  %455 = vst.msk [vmem:[%s900_s2 + $0x70] sm:$0xff] %vm15_vm0, %v423_v37 }
 0x112   :  { %471 = vst.msk [vmem:[%s900_s2 + $0xf0] sm:$0xff] %vm15_vm0, %v439_v38 }

// kernel: attention_forward.4
= control target key start
LH: loop header
LB: loop body
LE: loop exit
PB: predicated region body
PF: predicated region fallthrough
CT: control target
= control target key end

     0   :  { %s2039_s12 = smov 0   ;;  %s2041_s13 = smov 0   ;;  %s2427_s0 = inlined_call_operand.vmem [shape: f32[4,128,64], index: 0, kind: input, shape index: {}]   ;;  %s2428_s1 = inlined_call_operand.vmem [shape: f32[4,128,64], index: 1, kind: input, shape index: {}]   ;;  %s2429_s2 = inlined_call_operand.vmem [shape: f32[4,128,64], index: 2, kind: input, shape index: {}]   ;;  %s2430_s3 = inlined_call_operand.vmem [shape: f32[4,128,64], index: 3, kind: output, shape index: {}]  }
   0x1   :  { %s2043_s14 = smov 0  }
   0x2 LB: > { %s32_s15 = sadd.s32 1, %s2011_s13  ;;  %p1566_p0 = scmp.ge.s32.totalorder %s2015_s14, 1  ;;  %s2015_s14 = sphi %s2043_s14, %s13_s14   ;;  %s2011_s13 = sphi %s2041_s13, %s2434_s13   ;;  %s2007_s12 = sphi %s2039_s12, %s2433_s12  }
   0x3   : > { %p34_p1 = scmp.ge.s32.totalorder %s32_s15, 4  ;;  %p199_p2 = scmp.lt.s32.totalorder %s2015_s14, 5 }
   0x5   : > { %s2436_s15 = smov (%p34_p1, %s32_s15), 0  ;;  %p200_p3 = pnand %p1566_p0, %p199_p2 }
   0x6   : > { %p250_p4 = scmp.lt.s32.totalorder (!%p200_p3), %s2007_s12, 3  ;;  %vm325_vm0 = vcmask (!%p200_p3), 523264   ;;  %v2017_v41 = vmov (!%p200_p3), 0  }
   0x7   : > { %203 = sbr.rel (%p200_p3) target bundleno = 912 (0x390), region = 32  ;;  %vm2067_vm1 = vmpackc.low (!%p200_p3), %vm325_vm0, %vm325_vm0  ;;  %1895 = vset.pattern.permute.xlu0 (!%p200_p3), %v2017_v41  ;;  %1896 = vset.pattern.permute.xlu1 (!%p200_p3), %v2017_v41 }
   0xe   : > { %s2438_s12 = smov (!%p250_p4, %s2007_s12), 3 }
   0xf   : > { %s2057_s16 = sshll.u32 %s2438_s12, 7 }
  0x10   : > { %s2063_s19 = scalar_lea.vmem %s2428_s1, %s2057_s16  ;;  %s2079_s22 = scalar_lea.vmem %s2427_s0, %s2057_s16 }
  0x11   : > { %v358_v1 = vld [vmem:[%s2063_s19] sm:$0xff]  ;;  %v359_v2 = vld [vmem:[%s2063_s19 + $0x8] sm:$0xff]  ;;  %v360_v3 = vld [vmem:[%s2063_s19 + $0x10] sm:$0xff]  ;;  %s2209_s25 = scalar_lea.vmem %s2429_s2, %s2057_s16  ;;  %s2384_s28 = scalar_lea.vmem %s2430_s3, %s2057_s16 }
  0x12   : > { %v1789_v4 = vpack.c.bf16 %v359_v2, %v358_v1  ;;  %v361_v5 = vld [vmem:[%s2063_s19 + $0x18] sm:$0xff]  ;;  %v342_v7 = vld [vmem:[%s2079_s22] sm:$0xff]  ;;  %v363_v9 = vld [vmem:[%s2063_s19 + $0x28] sm:$0xff] }
  0x13   : > { %v1795_v6 = vpack.c.bf16 %v361_v5, %v360_v3  ;;  %v362_v8 = vld [vmem:[%s2063_s19 + $0x20] sm:$0xff]  ;;  %1709 = vmatprep.mubr.msk.f32.mxu0 %vm325_vm0, %v342_v7  ;;  %v364_v11 = vld [vmem:[%s2063_s19 + $0x30] sm:$0xff]  ;;  %v365_v12 = vld [vmem:[%s2063_s19 + $0x38] sm:$0xff] }
  0x14   : > { %1791 = vmatprep.subr.msk.bf16.mxu0 %vm2067_vm1, %v1789_v4  ;;  %v1801_v10 = vpack.c.bf16 %v363_v9, %v362_v8  ;;  %v1807_v13 = vpack.c.bf16 %v365_v12, %v364_v11  ;;  %v366_v14 = vld [vmem:[%s2063_s19 + $0x40] sm:$0xff]  ;;  %v367_v15 = vld [vmem:[%s2063_s19 + $0x48] sm:$0xff]  ;;  %v368_v17 = vld [vmem:[%s2063_s19 + $0x50] sm:$0xff] }
  0x15   : > { %1794 = vmatpush3.bf16.xpose.msk.msra.mxu0 %vm2067_vm1, %v1789_v4  ;;  %v1813_v16 = vpack.c.bf16 %v367_v15, %v366_v14  ;;  %v369_v18 = vld [vmem:[%s2063_s19 + $0x58] sm:$0xff]  ;;  %v370_v20 = vld [vmem:[%s2063_s19 + $0x60] sm:$0xff]  ;;  %v371_v21 = vld [vmem:[%s2063_s19 + $0x68] sm:$0xff] }
  0x16   : > { %1797 = vmatprep.subr.msk.bf16.mxu0 %vm2067_vm1, %v1795_v6  ;;  %v1819_v19 = vpack.c.bf16 %v369_v18, %v368_v17  ;;  %v1825_v22 = vpack.c.bf16 %v371_v21, %v370_v20  ;;  %v372_v23 = vld [vmem:[%s2063_s19 + $0x70] sm:$0xff]  ;;  %v373_v24 = vld [vmem:[%s2063_s19 + $0x78] sm:$0xff]  ;;  %v343_v26 = vld [vmem:[%s2079_s22 + $0x8] sm:$0xff] }
  0x17   : > { %v1831_v25 = vpack.c.bf16 %v373_v24, %v372_v23  ;;  %v344_v27 = vld [vmem:[%s2079_s22 + $0x10] sm:$0xff]  ;;  %v345_v28 = vld [vmem:[%s2079_s22 + $0x18] sm:$0xff]  ;;  %v346_v29 = vld [vmem:[%s2079_s22 + $0x20] sm:$0xff] }
  0x18   : > { %v347_v30 = vld [vmem:[%s2079_s22 + $0x28] sm:$0xff]  ;;  %v348_v31 = vld [vmem:[%s2079_s22 + $0x30] sm:$0xff]  ;;  %v349_v32 = vld [vmem:[%s2079_s22 + $0x38] sm:$0xff] }
  0x19   : > { %v350_v33 = vld [vmem:[%s2079_s22 + $0x40] sm:$0xff]  ;;  %v351_v34 = vld [vmem:[%s2079_s22 + $0x48] sm:$0xff]  ;;  %v352_v35 = vld [vmem:[%s2079_s22 + $0x50] sm:$0xff] }
  0x1a   : > { %v353_v36 = vld [vmem:[%s2079_s22 + $0x58] sm:$0xff]  ;;  %v354_v37 = vld [vmem:[%s2079_s22 + $0x60] sm:$0xff]  ;;  %v355_v38 = vld [vmem:[%s2079_s22 + $0x68] sm:$0xff] }
  0x1b   : > { %v356_v39 = vld [vmem:[%s2079_s22 + $0x70] sm:$0xff]  ;;  %v357_v40 = vld [vmem:[%s2079_s22 + $0x78] sm:$0xff]  ;;  %v374_v58 = vld [vmem:[%s2209_s25] sm:$0xff] }
  0x1c   : > { %v375_v59 = vld [vmem:[%s2209_s25 + $0x8] sm:$0xff]  ;;  %v376_v60 = vld [vmem:[%s2209_s25 + $0x10] sm:$0xff]  ;;  %v377_v62 = vld [vmem:[%s2209_s25 + $0x18] sm:$0xff] }
  0x1d   : > { %1800 = vmatpush3.bf16.xpose.msk.msra.mxu0 %vm2067_vm1, %v1795_v6  ;;  %v1837_v61 = vpack.c.bf16 %v375_v59, %v374_v58  ;;  %v1841_v63 = vpack.c.bf16 %v377_v62, %v376_v60  ;;  %v378_v0 = vld [vmem:[%s2209_s25 + $0x20] sm:$0xff]  ;;  %v379_v1 = vld [vmem:[%s2209_s25 + $0x28] sm:$0xff]  ;;  %v380_v3 = vld [vmem:[%s2209_s25 + $0x30] sm:$0xff] }
  0x1e   : > { %1803 = vmatprep.subr.msk.bf16.mxu0 %vm2067_vm1, %v1801_v10  ;;  %v1845_v2 = vpack.c.bf16 %v379_v1, %v378_v0  ;;  %v381_v4 = vld [vmem:[%s2209_s25 + $0x38] sm:$0xff]  ;;  %v382_v7 = vld [vmem:[%s2209_s25 + $0x40] sm:$0xff]  ;;  %v383_v8 = vld [vmem:[%s2209_s25 + $0x48] sm:$0xff] }
  0x1f   : > { %1838 = vmatprep.subr.bf16.mxu1 %v1837_v61  ;;  %v1849_v5 = vpack.c.bf16 %v381_v4, %v380_v3  ;;  %v1853_v9 = vpack.c.bf16 %v383_v8, %v382_v7  ;;  %v384_v12 = vld [vmem:[%s2209_s25 + $0x50] sm:$0xff]  ;;  %v387_v17 = vld [vmem:[%s2209_s25 + $0x68] sm:$0xff]  ;;  %v389_v21 = vld [vmem:[%s2209_s25 + $0x78] sm:$0xff] }
  0x20   : > { %1840 = vmatpush3.bf16.msra.mxu1 %v1837_v61  ;;  %v388_v20 = vld [vmem:[%s2209_s25 + $0x70] sm:$0xff] }
  0x21   : > { %1842 = vmatprep.subr.bf16.mxu1 %v1841_v63 }
  0x24   : > { %1844 = vmatpush3.bf16.msra.mxu1 %v1841_v63 }
  0x25   : > { %1806 = vmatpush3.bf16.xpose.msk.msra.mxu0 %vm2067_vm1, %v1801_v10  ;;  %1846 = vmatprep.subr.bf16.mxu1 %v1845_v2 }
  0x26   : > { %1809 = vmatprep.subr.msk.bf16.mxu0 %vm2067_vm1, %v1807_v13 }
  0x28   : > { %1848 = vmatpush3.bf16.msra.mxu1 %v1845_v2 }
  0x29   : > { %1850 = vmatprep.subr.bf16.mxu1 %v1849_v5 }
  0x2c   : > { %1852 = vmatpush3.bf16.msra.mxu1 %v1849_v5 }
  0x2d   : > { %1812 = vmatpush3.bf16.xpose.msk.msra.mxu0 %vm2067_vm1, %v1807_v13  ;;  %1854 = vmatprep.subr.bf16.mxu1 %v1853_v9  ;;  %v385_v13 = vld [vmem:[%s2209_s25 + $0x58] sm:$0xff] }
  0x2e   : > { %1815 = vmatprep.subr.msk.bf16.mxu0 %vm2067_vm1, %v1813_v16  ;;  %v1857_v14 = vpack.c.bf16 %v385_v13, %v384_v12 }
  0x30   : > { %1856 = vmatpush3.bf16.msra.mxu1 %v1853_v9 }
  0x31   : > { %1858 = vmatprep.subr.bf16.mxu1 %v1857_v14 }
  0x34   : > { %1860 = vmatpush3.bf16.msra.mxu1 %v1857_v14 }
  0x35   : > { %1818 = vmatpush3.bf16.xpose.msk.msra.mxu0 %vm2067_vm1, %v1813_v16  ;;  %v386_v16 = vld [vmem:[%s2209_s25 + $0x60] sm:$0xff] }
  0x36   : > { %1821 = vmatprep.subr.msk.bf16.mxu0 %vm2067_vm1, %v1819_v19  ;;  %v1861_v18 = vpack.c.bf16 %v387_v17, %v386_v16 }
  0x38   : > { %1862 = vmatprep.subr.bf16.mxu1 %v1861_v18 }
  0x39   : > { %1864 = vmatpush3.bf16.msra.mxu1 %v1861_v18 }
  0x3d   : > { %1824 = vmatpush3.bf16.xpose.msk.msra.mxu0 %vm2067_vm1, %v1819_v19 }
  0x3e   : > { %1827 = vmatprep.subr.msk.bf16.mxu0 %vm2067_vm1, %v1825_v22 }
  0x45   : > { %1830 = vmatpush3.bf16.xpose.msk.msra.mxu0 %vm2067_vm1, %v1825_v22  ;;  %v1865_v22 = vpack.c.bf16 %v389_v21, %v388_v20 }
  0x46   : > { %1833 = vmatprep.subr.msk.bf16.mxu0 %vm2067_vm1, %v1831_v25 }
  0x47   : > { %1866 = vmatprep.subr.bf16.mxu1 %v1865_v22 }
  0x48   : > { %1868 = vmatpush3.bf16.msra.mxu1 %v1865_v22 }
  0x4d   : > { %1836 = vmatpush3.bf16.xpose.msk.msra.mxu0 %vm2067_vm1, %v1831_v25 }
  0x54   : > { %1710 = vmatmul.mubr.msk.f32.vlgmr.msra.gmra.mrb[0].mxu0 %vm325_vm0, %v343_v26 }
  0x55   : > { %1712 = vmatprep.mubr.msk.f32.mxu0 %vm325_vm0, %v344_v27 }
  0x58   : > { %1713 = vmatmul.mubr.msk.f32.gmra.mrb[2].mxu0 %vm325_vm0, %v345_v28 }
  0x59   : > { %1715 = vmatprep.mubr.msk.f32.mxu0 %vm325_vm0, %v346_v29 }
  0x5c   : > { %1716 = vmatmul.mubr.msk.f32.gmra.mrb[4].mxu0 %vm325_vm0, %v347_v30 }
  0x5d   : > { %1718 = vmatprep.mubr.msk.f32.mxu0 %vm325_vm0, %v348_v31 }
  0x60   : > { %1719 = vmatmul.mubr.msk.f32.gmra.mrb[6].mxu0 %vm325_vm0, %v349_v32  ;;  %v2018_v32 = vmov 0.0  }
  0x61   : > { %1721 = vmatprep.mubr.msk.f32.mxu0 %vm325_vm0, %v350_v33  ;;  %326 = vst.msk [vmem:[#allocation2] sm:$0xff] %vm325_vm0, %v2018_v32  ;;  %327 = vst.msk [vmem:[#allocation2 + $0x8] sm:$0xff] %vm325_vm0, %v2018_v32 }
  0x62   : > { %328 = vst.msk [vmem:[#allocation2 + $0x10] sm:$0xff] %vm325_vm0, %v2018_v32  ;;  %329 = vst.msk [vmem:[#allocation2 + $0x18] sm:$0xff] %vm325_vm0, %v2018_v32 }
  0x63   : > { %330 = vst.msk [vmem:[#allocation2 + $0x20] sm:$0xff] %vm325_vm0, %v2018_v32  ;;  %331 = vst.msk [vmem:[#allocation2 + $0x28] sm:$0xff] %vm325_vm0, %v2018_v32 }
  0x64   : > { %1722 = vmatmul.mubr.msk.f32.gmra.mrb[8].mxu0 %vm325_vm0, %v351_v34  ;;  %332 = vst.msk [vmem:[#allocation2 + $0x30] sm:$0xff] %vm325_vm0, %v2018_v32  ;;  %333 = vst.msk [vmem:[#allocation2 + $0x38] sm:$0xff] %vm325_vm0, %v2018_v32 }
  0x65   : > { %1724 = vmatprep.mubr.msk.f32.mxu0 %vm325_vm0, %v352_v35  ;;  %334 = vst.msk [vmem:[#allocation2 + $0x40] sm:$0xff] %vm325_vm0, %v2018_v32  ;;  %335 = vst.msk [vmem:[#allocation2 + $0x48] sm:$0xff] %vm325_vm0, %v2018_v32 }
  0x66   : > { %336 = vst.msk [vmem:[#allocation2 + $0x50] sm:$0xff] %vm325_vm0, %v2018_v32  ;;  %337 = vst.msk [vmem:[#allocation2 + $0x58] sm:$0xff] %vm325_vm0, %v2018_v32 }
  0x67   : > { %338 = vst.msk [vmem:[#allocation2 + $0x60] sm:$0xff] %vm325_vm0, %v2018_v32  ;;  %339 = vst.msk [vmem:[#allocation2 + $0x68] sm:$0xff] %vm325_vm0, %v2018_v32 }
  0x68   : > { %1725 = vmatmul.mubr.msk.f32.gmra.mrb[10].mxu0 %vm325_vm0, %v353_v36  ;;  %340 = vst.msk [vmem:[#allocation2 + $0x70] sm:$0xff] %vm325_vm0, %v2018_v32  ;;  %341 = vst.msk [vmem:[#allocation2 + $0x78] sm:$0xff] %vm325_vm0, %v2018_v32 }
  0x69   : > { %1727 = vmatprep.mubr.msk.f32.mxu0 %vm325_vm0, %v354_v37 }
  0x6c   : > { %1728 = vmatmul.mubr.msk.f32.gmra.mrb[12].mxu0 %vm325_vm0, %v355_v38 }
  0x6d   : > { %1730 = vmatprep.mubr.msk.f32.mxu0 %vm325_vm0, %v356_v39 }
  0x70   : > { %1731 = vmatmul.mubr.msk.f32.gmra.mrb[14].mxu0 %vm325_vm0, %v357_v40 }
 0x127   : > { %v2157_v42 = vpop.f32.mrb[0].mxu0 }
 0x128   : > { %v2159_v43 = vpop.f32.mrb[1].mxu0 }
 0x129   : > { %648 = vmax.xlane.f32.xlu0 %v2159_v43 }
 0x12b   : > { %v2162_v44 = vpop.f32.mrb[2].mxu0 }
 0x12c   : > { %654 = vmax.xlane.f32.xlu1 %v2162_v44  ;;  %v2165_v45 = vpop.f32.mrb[3].mxu0 }
 0x12d   : > { %650 = vmax.xlane.f32.xlu0 %v2157_v42 }
 0x12f   : > { %v2168_v46 = vpop.f32.mrb[4].mxu0 }
 0x130   : > { %652 = vmax.xlane.f32.xlu1 %v2165_v45  ;;  %v2171_v47 = vpop.f32.mrb[5].mxu0 }
 0x131   : > { %656 = vmax.xlane.f32.xlu0 %v2171_v47 }
 0x133   : > { %v2174_v48 = vpop.f32.mrb[6].mxu0 }
 0x134   : > { %658 = vmax.xlane.f32.xlu1 %v2168_v46  ;;  %v2177_v49 = vpop.f32.mrb[7].mxu0 }
 0x135   : > { %660 = vmax.xlane.f32.xlu0 %v2177_v49 }
 0x137   : > { %v2180_v50 = vpop.f32.mrb[8].mxu0 }
 0x138   : > { %662 = vmax.xlane.f32.xlu1 %v2174_v48  ;;  %v2183_v51 = vpop.f32.mrb[9].mxu0 }
 0x139   : > { %664 = vmax.xlane.f32.xlu0 %v2183_v51 }
 0x13b   : > { %v2186_v52 = vpop.f32.mrb[10].mxu0 }
 0x13c   : > { %666 = vmax.xlane.f32.xlu1 %v2180_v50  ;;  %v2189_v53 = vpop.f32.mrb[11].mxu0 }
 0x13d   : > { %668 = vmax.xlane.f32.xlu0 %v2189_v53 }
 0x13f   : > { %v2192_v54 = vpop.f32.mrb[12].mxu0 }
 0x140   : > { %670 = vmax.xlane.f32.xlu1 %v2186_v52  ;;  %v2195_v55 = vpop.f32.mrb[13].mxu0 }
 0x141   : > { %672 = vmax.xlane.f32.xlu0 %v2195_v55 }
 0x143   : > { %v2198_v56 = vpop.f32.mrb[14].mxu0 }
 0x144   : > { %674 = vmax.xlane.f32.xlu1 %v2192_v54  ;;  %v2201_v57 = vpop.f32.mrb[15].mxu0 }
 0x145   : > { %676 = vmax.xlane.f32.xlu0 %v2201_v57 }
 0x148   : > { %678 = vmax.xlane.f32.xlu1 %v2198_v56 }
 0x1b6   : > { %v649_v6 = vpop.xlane.xlu0 %648 }
 0x1b7   : > { %746 = vperm.xlu0 %1895, %v649_v6   ;;  %v696_v25 = vsub.f32 -inf, %v649_v6 }
 0x1b9   : > { %v2221_v10 = vpop.xlane.xlu1 %654  ;;  %v712_v28 = vmul.f32 1.442695, %v696_v25 }
 0x1ba   : > { %v651_v11 = vpop.xlane.xlu0 %650 }
 0x1bb   : > { %751 = vperm.xlu1 %1896, %v651_v11   ;;  %1897 = vpow2.f32 %v712_v28  ;;  %v697_v33 = vsub.f32 -inf, %v651_v11 }
 0x1bd   : > { %v653_v15 = vpop.xlane.xlu1 %652  ;;  %v714_v36 = vmul.f32 1.442695, %v697_v33 }
 0x1be   : > { %v2234_v24 = vpop.xlane.xlu0 %656  ;;  %v698_v37 = vsub.f32 -inf, %v653_v15 }
 0x1bf   : > { %761 = vperm.xlu1 %1896, %v2221_v10   ;;  %1899 = vpow2.f32 %v714_v36 }
 0x1c0   : > { %v716_v40 = vmul.f32 1.442695, %v698_v37 }
 0x1c1   : > { %v2228_v19 = vpop.xlane.xlu1 %658 }
 0x1c2   : > { %v2240_v27 = vpop.xlane.xlu0 %660  ;;  %1901 = vpow2.f32 %v716_v40 }
 0x1c3   : > { %756 = vperm.xlu1 %1896, %v653_v15  }
 0x1c5   : > { %v2232_v23 = vpop.xlane.xlu1 %662  ;;  %v2275_v38 = vpop.eup %1897 }
 0x1c6   : > { %v2246_v30 = vpop.xlane.xlu0 %664 }
 0x1c7   : > { %771 = vperm.xlu1 %1896, %v2228_v19  }
 0x1c9   : > { %v2237_v26 = vpop.xlane.xlu1 %666  ;;  %v2285_v58 = vpop.eup %1899 }
 0x1ca   : > { %791 = vperm.xlu0 %1895, %v2237_v26   ;;  %v2269_v34 = vpop.xlane.xlu0 %668 }
 0x1cb   : > { %766 = vperm.xlu1 %1896, %v2234_v24  }
 0x1cc   : > { %v2288_v59 = vpop.eup %1901 }
 0x1cd   : > { %v2243_v29 = vpop.xlane.xlu1 %670 }
 0x1ce   : > { %801 = vperm.xlu0 %1895, %v2243_v29   ;;  %v2278_v39 = vpop.xlane.xlu0 %672 }
 0x1cf   : > { %781 = vperm.xlu1 %1896, %v2232_v23  }
 0x1d1   : > { %v2249_v31 = vpop.xlane.xlu1 %674 }
 0x1d2   : > { %811 = vperm.xlu0 %1895, %v2249_v31   ;;  %v2282_v41 = vpop.xlane.xlu0 %676 }
 0x1d3   : > { %776 = vperm.xlu1 %1896, %v2240_v27  }
 0x1d5   : > { %v2271_v35 = vpop.xlane.xlu1 %678 }
 0x1d6   : > { %821 = vperm.xlu0 %1895, %v2271_v35  }
 0x1d7   : > { %786 = vperm.xlu1 %1896, %v2246_v30  }
 0x1da   : > { %986 = vperm.xlu0 %1895, %v2275_v38  }
 0x1db   : > { %796 = vperm.xlu1 %1896, %v2269_v34  }
 0x1df   : > { %806 = vperm.xlu1 %1896, %v2278_v39  }
 0x1e3   : > { %816 = vperm.xlu1 %1896, %v2282_v41  }
 0x1e7   : > { %991 = vperm.xlu1 %1896, %v2285_v58  }
 0x1eb   : > { %996 = vperm.xlu1 %1896, %v2288_v59  }
 0x236   : > { %v747_v60 = vpop.permute.xlu0 %746 }
 0x237   : > { %v824_v61 = vsub.f32 %v2159_v43, %v747_v60 }
 0x239   : > { %v840_v62 = vmul.f32 1.442695, %v824_v61 }
 0x23a   : > { %v752_v63 = vpop.permute.xlu1 %751 }
 0x23b   : > { %1903 = vpow2.f32 %v840_v62  ;;  %v825_v0 = vsub.f32 %v2157_v42, %v752_v63 }
 0x23d   : > { %v842_v1 = vmul.f32 1.442695, %v825_v0 }
 0x23e   : > { %v762_v2 = vpop.permute.xlu1 %761 }
 0x23f   : > { %1905 = vpow2.f32 %v842_v1  ;;  %v827_v3 = vsub.f32 %v2162_v44, %v762_v2 }
 0x241   : > { %v846_v4 = vmul.f32 1.442695, %v827_v3 }
 0x242   : > { %v757_v5 = vpop.permute.xlu1 %756 }
 0x243   : > { %1907 = vpow2.f32 %v846_v4  ;;  %v826_v6 = vsub.f32 %v2165_v45, %v757_v5 }
 0x245   : > { %v1904_v7 = vpop.eup %1903  ;;  %v844_v8 = vmul.f32 1.442695, %v826_v6 }
 0x246   : > { %v772_v9 = vpop.permute.xlu1 %771  ;;  %904 = vadd.xlane.f32.xlu1 %v1904_v7  ;;  %1765 = vmatprep.mubr.f32.mxu1 %v1904_v7 }
 0x247   : > { %1909 = vpow2.f32 %v844_v8  ;;  %v829_v43 = vsub.f32 %v2168_v46, %v772_v9 }
 0x249   : > { %v1906_v11 = vpop.eup %1905  ;;  %v850_v42 = vmul.f32 1.442695, %v829_v43  ;;  %v792_v12 = vpop.permute.xlu0 %791 }
 0x24a   : > { %v767_v13 = vpop.permute.xlu1 %766  ;;  %906 = vadd.xlane.f32.xlu0 %v1906_v11  ;;  %1766 = vmatmul.mubr.f32.vlgmr.msra.gmra.mrb[0].mxu1 %v1906_v11  ;;  %v833_v18 = vsub.f32 %v2180_v50, %v792_v12 }
 0x24b   : > { %1911 = vpow2.f32 %v850_v42  ;;  %v828_v44 = vsub.f32 %v2171_v47, %v767_v13  ;;  %v702_v13 = vsub.f32 -inf, %v2240_v27  ;;  %v703_v27 = vsub.f32 -inf, %v2232_v23 }
 0x24c   : > { %v858_v47 = vmul.f32 1.442695, %v833_v18 }
 0x24d   : > { %v1908_v14 = vpop.eup %1907  ;;  %v848_v15 = vmul.f32 1.442695, %v828_v44  ;;  %v802_v45 = vpop.permute.xlu0 %801  ;;  %v699_v44 = vsub.f32 -inf, %v2221_v10 }
 0x24e   : > { %v782_v16 = vpop.permute.xlu1 %781  ;;  %910 = vadd.xlane.f32.xlu1 %v1908_v14  ;;  %v835_v28 = vsub.f32 %v2186_v52, %v802_v45 }
 0x24f   : > { %1913 = vpow2.f32 %v848_v15  ;;  %v831_v17 = vsub.f32 %v2174_v48, %v782_v16  ;;  %v704_v15 = vsub.f32 -inf, %v2246_v30  ;;  %v718_v45 = vmul.f32 1.442695, %v699_v44 }
 0x250   : > { %v862_v50 = vmul.f32 1.442695, %v835_v28  ;;  %v705_v30 = vsub.f32 -inf, %v2237_v26 }
 0x251   : > { %v1910_v46 = vpop.eup %1909  ;;  %v854_v20 = vmul.f32 1.442695, %v831_v17  ;;  %v812_v22 = vpop.permute.xlu0 %811  ;;  %v728_v16 = vmul.f32 1.442695, %v704_v15  ;;  %v706_v17 = vsub.f32 -inf, %v2269_v34  ;;  %v710_v34 = vsub.f32 -inf, %v2282_v41 }
 0x252   : > { %v777_v21 = vpop.permute.xlu1 %776  ;;  %908 = vadd.xlane.f32.xlu0 %v1910_v46  ;;  %1768 = vmatprep.mubr.f32.mxu1 %v1910_v46  ;;  %v837_v37 = vsub.f32 %v2192_v54, %v812_v22  ;;  %v730_v23 = vmul.f32 1.442695, %v705_v30  ;;  %v709_v41 = vsub.f32 -inf, %v2249_v31 }
 0x253   : > { %1915 = vpow2.f32 %v854_v20  ;;  %v830_v25 = vsub.f32 %v2177_v49, %v777_v21  ;;  %1769 = vmatmul.mubr.f32.gmra.mrb[2].mxu1 %v1908_v14  ;;  %v724_v14 = vmul.f32 1.442695, %v702_v13  ;;  %v732_v46 = vmul.f32 1.442695, %v706_v17 }
 0x254   : > { %v866_v52 = vmul.f32 1.442695, %v837_v37  ;;  %v708_v20 = vsub.f32 -inf, %v2278_v39  ;;  %v726_v21 = vmul.f32 1.442695, %v703_v27  ;;  %v707_v39 = vsub.f32 -inf, %v2243_v29 }
 0x255   : > { %v1912_v32 = vpop.eup %1911  ;;  %v852_v33 = vmul.f32 1.442695, %v830_v25  ;;  %v822_v60 = vpop.permute.xlu0 %821  ;;  %v740_v25 = vmul.f32 1.442695, %v710_v34  ;;  %v738_v29 = vmul.f32 1.442695, %v709_v41 }
 0x256   : > { %v787_v36 = vpop.permute.xlu1 %786  ;;  %914 = vadd.xlane.f32.xlu1 %v1912_v32  ;;  %v839_v63 = vsub.f32 %v2198_v56, %v822_v60  ;;  %v734_v26 = vmul.f32 1.442695, %v707_v39 }
 0x257   : > { %1917 = vpow2.f32 %v852_v33  ;;  %v832_v48 = vsub.f32 %v2183_v51, %v787_v36  ;;  %v711_v36 = vsub.f32 -inf, %v2271_v35 }
 0x258   : > { %1919 = vpow2.f32 %v858_v47  ;;  %v870_v2 = vmul.f32 1.442695, %v839_v63 }
 0x259   : > { %v1914_v40 = vpop.eup %1913  ;;  %v856_v61 = vmul.f32 1.442695, %v832_v48  ;;  %v742_v37 = vmul.f32 1.442695, %v711_v36  ;;  %v2349_v63 = vpop.permute.xlu0 %986 }
 0x25a   : > { %v797_v62 = vpop.permute.xlu1 %796  ;;  %912 = vadd.xlane.f32.xlu0 %v1914_v40  ;;  %1771 = vmatprep.mubr.f32.mxu1 %v1914_v40 }
 0x25b   : > { %1921 = vpow2.f32 %v856_v61  ;;  %v834_v49 = vsub.f32 %v2189_v53, %v797_v62  ;;  %1772 = vmatmul.mubr.f32.gmra.mrb[4].mxu1 %v1912_v32 }
 0x25c   : > { %1923 = vpow2.f32 %v862_v50 }
 0x25d   : > { %v1916_v0 = vpop.eup %1915  ;;  %v860_v51 = vmul.f32 1.442695, %v834_v49 }
 0x25e   : > { %v807_v1 = vpop.permute.xlu1 %806  ;;  %918 = vadd.xlane.f32.xlu1 %v1916_v0 }
 0x25f   : > { %1925 = vpow2.f32 %v860_v51  ;;  %v836_v54 = vsub.f32 %v2195_v55, %v807_v1  ;;  %v889_v1 = vmul.f32 0.0, %v2285_v58 }
 0x260   : > { %1927 = vpow2.f32 %v866_v52  ;;  %v888_v52 = vmul.f32 0.0, %v2275_v38 }
 0x261   : > { %v1918_v3 = vpop.eup %1917  ;;  %v864_v4 = vmul.f32 1.442695, %v836_v54 }
 0x262   : > { %v1920_v5 = vpop.eup %1919  ;;  %916 = vadd.xlane.f32.xlu0 %v1918_v3  ;;  %v817_v6 = vpop.permute.xlu1 %816  ;;  %1774 = vmatprep.mubr.f32.mxu1 %v1918_v3 }
 0x263   : > { %1929 = vpow2.f32 %v864_v4  ;;  %v838_v53 = vsub.f32 %v2201_v57, %v817_v6  ;;  %922 = vadd.xlane.f32.xlu1 %v1920_v5  ;;  %1775 = vmatmul.mubr.f32.gmra.mrb[6].mxu1 %v1916_v0  ;;  %v700_v57 = vsub.f32 -inf, %v2234_v24  ;;  %v701_v24 = vsub.f32 -inf, %v2228_v19 }
 0x264   : > { %1931 = vpow2.f32 %v870_v2  ;;  %v736_v19 = vmul.f32 1.442695, %v708_v20  ;;  %v890_v6 = vmul.f32 0.0, %v2288_v59 }
 0x265   : > { %v1922_v56 = vpop.eup %1921  ;;  %v868_v7 = vmul.f32 1.442695, %v838_v53  ;;  %v720_v12 = vmul.f32 1.442695, %v700_v57  ;;  %v722_v18 = vmul.f32 1.442695, %v701_v24 }
 0x266   : > { %v1924_v8 = vpop.eup %1923  ;;  %920 = vadd.xlane.f32.xlu0 %v1922_v56  ;;  %1777 = vmatprep.mubr.f32.mxu1 %v1922_v56  ;;  %v2344_v62 = vpop.permute.xlu1 %991 }
 0x267   : > { %1933 = vpow2.f32 %v868_v7  ;;  %926 = vadd.xlane.f32.xlu1 %v1924_v8  ;;  %1778 = vmatmul.mubr.f32.gmra.mrb[8].mxu1 %v1920_v5 }
 0x268   : > { %1935 = vpow2.f32 %v720_v12 }
 0x269   : > { %v1926_v55 = vpop.eup %1925  ;;  %1937 = vpow2.f32 %v724_v14 }
 0x26a   : > { %v1928_v9 = vpop.eup %1927  ;;  %924 = vadd.xlane.f32.xlu0 %v1926_v55  ;;  %1780 = vmatprep.mubr.f32.mxu1 %v1926_v55  ;;  %1939 = vpow2.f32 %v718_v45  ;;  %v2346_v49 = vpop.permute.xlu1 %996 }
 0x26b   : > { %930 = vadd.xlane.f32.xlu1 %v1928_v9  ;;  %1781 = vmatmul.mubr.f32.gmra.mrb[10].mxu1 %v1924_v8  ;;  %1941 = vpow2.f32 %v728_v16 }
 0x26c   : > { %1943 = vpow2.f32 %v722_v18 }
 0x26d   : > { %v1930_v43 = vpop.eup %1929  ;;  %1945 = vpow2.f32 %v732_v46 }
 0x26e   : > { %v1932_v11 = vpop.eup %1931  ;;  %928 = vadd.xlane.f32.xlu0 %v1930_v43  ;;  %1783 = vmatprep.mubr.f32.mxu1 %v1930_v43  ;;  %1947 = vpow2.f32 %v726_v21 }
 0x26f   : > { %934 = vadd.xlane.f32.xlu1 %v1932_v11  ;;  %1784 = vmatmul.mubr.f32.gmra.mrb[12].mxu1 %v1928_v9  ;;  %1949 = vpow2.f32 %v736_v19 }
 0x270   : > { %1951 = vpow2.f32 %v730_v23 }
 0x271   : > { %v1934_v42 = vpop.eup %1933  ;;  %1953 = vpow2.f32 %v740_v25 }
 0x272   : > { %932 = vadd.xlane.f32.xlu0 %v1934_v42  ;;  %1786 = vmatprep.mubr.f32.mxu1 %v1934_v42  ;;  %v2315_v10 = vpop.eup %1935  ;;  %1955 = vpow2.f32 %v734_v26 }
 0x273   : > { %1787 = vmatmul.mubr.f32.gmra.mrb[14].mxu1 %v1932_v11  ;;  %v2320_v22 = vpop.eup %1937  ;;  %1957 = vpow2.f32 %v738_v29  ;;  %v892_v58 = vmul.f32 0.0, %v2315_v10 }
 0x274   : > { %v1940_v47 = vpop.eup %1939  ;;  %1959 = vpow2.f32 %v742_v37  ;;  %v894_v44 = vmul.f32 0.0, %v2320_v22 }
 0x275   : > { %v2324_v28 = vpop.eup %1941  ;;  %v891_v3 = vmul.f32 0.0, %v1940_v47 }
 0x276   : > { %v1944_v32 = vpop.eup %1943  ;;  %v896_v18 = vmul.f32 0.0, %v2324_v28 }
 0x277   : > { %v2328_v33 = vpop.eup %1945  ;;  %v893_v38 = vmul.f32 0.0, %v1944_v32 }
 0x278   : > { %v1948_v48 = vpop.eup %1947  ;;  %v898_v19 = vmul.f32 0.0, %v2328_v33 }
 0x279   : > { %v2332_v50 = vpop.eup %1949  ;;  %v895_v42 = vmul.f32 0.0, %v1948_v48 }
 0x27a   : > { %v1952_v31 = vpop.eup %1951 }
 0x27b   : > { %v2335_v40 = vpop.eup %1953  ;;  %v897_v14 = vmul.f32 0.0, %v1952_v31 }
 0x27c   : > { %v1956_v60 = vpop.eup %1955  ;;  %v902_v37 = vmul.f32 0.0, %v2335_v40 }
 0x27d   : > { %v2338_v61 = vpop.eup %1957  ;;  %v899_v27 = vmul.f32 0.0, %v1956_v60 }
 0x27e   : > { %v2341_v35 = vpop.eup %1959  ;;  %v901_v34 = vmul.f32 0.0, %v2338_v61 }
 0x27f   : > { %v903_v26 = vmul.f32 0.0, %v2341_v35 }
 0x280   : > { %1006 = vperm.xlu1 %1896, %v2315_v10  }
 0x284   : > { %1016 = vperm.xlu1 %1896, %v2320_v22  }
 0x288   : > { %1026 = vperm.xlu1 %1896, %v2324_v28   ;;  %1001 = vperm.xlu0 %1895, %v1940_v47   ;;  %v900_v28 = vmul.f32 0.0, %v2332_v50 }
 0x28c   : > { %1036 = vperm.xlu1 %1896, %v2328_v33   ;;  %1011 = vperm.xlu0 %1895, %v1944_v32  }
 0x290   : > { %1046 = vperm.xlu1 %1896, %v2332_v50   ;;  %1021 = vperm.xlu0 %1895, %v1948_v48  }
 0x294   : > { %1056 = vperm.xlu1 %1896, %v2335_v40   ;;  %1031 = vperm.xlu0 %1895, %v1952_v31   ;;  %v968_v40 = vld [vmem:[#allocation2] sm:$0xff] }
 0x298   : > { %1041 = vperm.xlu0 %1895, %v1956_v60  }
 0x29c   : > { %1051 = vperm.xlu0 %1895, %v2338_v61  }
 0x2a0   : > { %1061 = vperm.xlu0 %1895, %v2341_v35  }
 0x2d3   : > { %v905_v0 = vpop.xlane.xlu1 %904 }
 0x2d4   : > { %v936_v51 = vadd.f32 %v905_v0, %v888_v52 }
 0x2d6   : > { %1961 = vrcp.f32 %v936_v51 }
 0x2d7   : > { %v907_v54 = vpop.xlane.xlu0 %906 }
 0x2d8   : > { %v937_v2 = vadd.f32 %v907_v54, %v889_v1  ;;  %v969_v54 = vld [vmem:[#allocation2 + $0x8] sm:$0xff] }
 0x2da   : > { %1963 = vrcp.f32 %v937_v2  ;;  %v1065_v2 = vmul.f32 %v2344_v62, %v969_v54 }
 0x2db   : > { %v911_v4 = vpop.xlane.xlu1 %910 }
 0x2dc   : > { %v939_v5 = vadd.f32 %v911_v4, %v891_v3  ;;  %v1064_v3 = vmul.f32 %v2349_v63, %v968_v40 }
 0x2de   : > { %1965 = vrcp.f32 %v939_v5 }
 0x2df   : > { %v909_v53 = vpop.xlane.xlu0 %908 }
 0x2e0   : > { %v1962_v56 = vpop.eup %1961  ;;  %v938_v7 = vadd.f32 %v909_v53, %v890_v6 }
 0x2e1   : > { %1326 = vperm.xlu1 %1896, %v1962_v56  }
 0x2e2   : > { %1967 = vrcp.f32 %v938_v7  ;;  %v971_v7 = vld [vmem:[#allocation2 + $0x18] sm:$0xff] }
 0x2e3   : > { %v915_v8 = vpop.xlane.xlu1 %914 }
 0x2e4   : > { %v1964_v55 = vpop.eup %1963  ;;  %v941_v9 = vadd.f32 %v915_v8, %v893_v38  ;;  %v970_v38 = vld [vmem:[#allocation2 + $0x10] sm:$0xff] }
 0x2e5   : > { %1331 = vperm.xlu0 %1895, %v1964_v55  }
 0x2e6   : > { %1969 = vrcp.f32 %v941_v9 }
 0x2e7   : > { %v913_v43 = vpop.xlane.xlu0 %912 }
 0x2e8   : > { %v1966_v57 = vpop.eup %1965  ;;  %v940_v11 = vadd.f32 %v913_v43, %v892_v58  ;;  %v1066_v58 = vmul.f32 %v2346_v49, %v970_v38 }
 0x2e9   : > { %1341 = vperm.xlu0 %1895, %v1966_v57  }
 0x2ea   : > { %1971 = vrcp.f32 %v940_v11  ;;  %v973_v11 = vld [vmem:[#allocation2 + $0x28] sm:$0xff] }
 0x2eb   : > { %v919_v59 = vpop.xlane.xlu1 %918 }
 0x2ec   : > { %v1968_v12 = vpop.eup %1967  ;;  %v943_v13 = vadd.f32 %v919_v59, %v895_v42  ;;  %v972_v59 = vld [vmem:[#allocation2 + $0x20] sm:$0xff] }
 0x2ed   : > { %1336 = vperm.xlu1 %1896, %v1968_v12  }
 0x2ee   : > { %1973 = vrcp.f32 %v943_v13 }
 0x2ef   : > { %v917_v15 = vpop.xlane.xlu0 %916 }
 0x2f0   : > { %v1970_v45 = vpop.eup %1969  ;;  %v923_v24 = vpop.xlane.xlu1 %922  ;;  %v942_v16 = vadd.f32 %v917_v15, %v894_v44 }
 0x2f1   : > { %v945_v17 = vadd.f32 %v923_v24, %v897_v14  ;;  %1351 = vperm.xlu0 %1895, %v1970_v45  }
 0x2f2   : > { %1975 = vrcp.f32 %v942_v16 }
 0x2f3   : > { %1977 = vrcp.f32 %v945_v17  ;;  %v921_v46 = vpop.xlane.xlu0 %920  ;;  %v975_v17 = vld [vmem:[#allocation2 + $0x38] sm:$0xff] }
 0x2f4   : > { %v1972_v20 = vpop.eup %1971  ;;  %v927_v10 = vpop.xlane.xlu1 %926  ;;  %v944_v21 = vadd.f32 %v921_v46, %v896_v18  ;;  %v974_v18 = vld [vmem:[#allocation2 + $0x30] sm:$0xff] }
 0x2f5   : > { %v947_v30 = vadd.f32 %v927_v10, %v899_v27  ;;  %1346 = vperm.xlu1 %1896, %v1972_v20   ;;  %v977_v20 = vld [vmem:[#allocation2 + $0x48] sm:$0xff] }
 0x2f6   : > { %1979 = vrcp.f32 %v944_v21 }
 0x2f7   : > { %1981 = vrcp.f32 %v947_v30  ;;  %v925_v22 = vpop.xlane.xlu0 %924  ;;  %v976_v30 = vld [vmem:[#allocation2 + $0x40] sm:$0xff] }
 0x2f8   : > { %v1974_v23 = vpop.eup %1973  ;;  %v931_v39 = vpop.xlane.xlu1 %930  ;;  %v946_v25 = vadd.f32 %v925_v22, %v898_v19 }
 0x2f9   : > { %v949_v47 = vadd.f32 %v931_v39, %v901_v34  ;;  %1361 = vperm.xlu0 %1895, %v1974_v23  }
 0x2fa   : > { %1983 = vrcp.f32 %v946_v25 }
 0x2fb   : > { %1985 = vrcp.f32 %v949_v47  ;;  %v929_v41 = vpop.xlane.xlu0 %928  ;;  %v979_v47 = vld [vmem:[#allocation2 + $0x58] sm:$0xff] }
 0x2fc   : > { %v1976_v32 = vpop.eup %1975  ;;  %v935_v29 = vpop.xlane.xlu1 %934  ;;  %v948_v36 = vadd.f32 %v929_v41, %v900_v28 }
 0x2fd   : > { %v1978_v33 = vpop.eup %1977  ;;  %v951_v48 = vadd.f32 %v935_v29, %v903_v26  ;;  %1356 = vperm.xlu1 %1896, %v1976_v32   ;;  %v978_v26 = vld [vmem:[#allocation2 + $0x50] sm:$0xff] }
 0x2fe   : > { %1987 = vrcp.f32 %v948_v36  ;;  %1371 = vperm.xlu0 %1895, %v1978_v33  }
 0x2ff   : > { %1989 = vrcp.f32 %v951_v48  ;;  %v933_v31 = vpop.xlane.xlu0 %932 }
 0x300   : > { %v1980_v60 = vpop.eup %1979  ;;  %v950_v61 = vadd.f32 %v933_v31, %v902_v37  ;;  %v1007_v55 = vpop.permute.xlu1 %1006  ;;  %v981_v31 = vld [vmem:[#allocation2 + $0x68] sm:$0xff] }
 0x301   : > { %v1982_v52 = vpop.eup %1981  ;;  %1366 = vperm.xlu1 %1896, %v1980_v60   ;;  %v1068_v44 = vmul.f32 %v1007_v55, %v972_v59 }
 0x302   : > { %1991 = vrcp.f32 %v950_v61  ;;  %1381 = vperm.xlu0 %1895, %v1982_v52   ;;  %v980_v61 = vld [vmem:[#allocation2 + $0x60] sm:$0xff] }
 0x304   : > { %v1984_v50 = vpop.eup %1983  ;;  %v1017_v12 = vpop.permute.xlu1 %1016 }
 0x305   : > { %v1986_v35 = vpop.eup %1985  ;;  %1376 = vperm.xlu1 %1896, %v1984_v50   ;;  %v1070_v46 = vmul.f32 %v1017_v12, %v974_v18 }
 0x306   : > { %1391 = vperm.xlu0 %1895, %v1986_v35  }
 0x307   : > { %v1002_v5 = vpop.permute.xlu0 %1001 }
 0x308   : > { %v1988_v0 = vpop.eup %1987  ;;  %v1067_v9 = vmul.f32 %v1002_v5, %v971_v7  ;;  %v1027_v49 = vpop.permute.xlu1 %1026 }
 0x309   : > { %v1990_v51 = vpop.eup %1989  ;;  %1386 = vperm.xlu1 %1896, %v1988_v0   ;;  %v1072_v25 = vmul.f32 %v1027_v49, %v976_v30 }
 0x30a   : > { %1401 = vperm.xlu0 %1895, %v1990_v51  }
 0x30b   : > { %v1012_v8 = vpop.permute.xlu0 %1011 }
 0x30c   : > { %v1992_v1 = vpop.eup %1991  ;;  %v1069_v13 = vmul.f32 %v1012_v8, %v973_v11  ;;  %v1037_v19 = vpop.permute.xlu1 %1036 }
 0x30d   : > { %1396 = vperm.xlu1 %1896, %v1992_v1   ;;  %v1074_v37 = vmul.f32 %v1037_v19, %v978_v26  ;;  %v983_v1 = vld [vmem:[#allocation2 + $0x78] sm:$0xff] }
 0x30f   : > { %v1022_v42 = vpop.permute.xlu0 %1021 }
 0x310   : > { %v1071_v27 = vmul.f32 %v1022_v42, %v975_v17  ;;  %v1047_v33 = vpop.permute.xlu1 %1046 }
 0x311   : > { %v1076_v51 = vmul.f32 %v1047_v33, %v980_v61 }
 0x313   : > { %v1032_v24 = vpop.permute.xlu0 %1031 }
 0x314   : > { %v1073_v39 = vmul.f32 %v1032_v24, %v977_v20 }
 0x317   : > { %v1042_v10 = vpop.permute.xlu0 %1041 }
 0x318   : > { %v1075_v48 = vmul.f32 %v1042_v10, %v979_v47 }
 0x31b   : > { %v1052_v29 = vpop.permute.xlu0 %1051 }
 0x31c   : > { %v1077_v0 = vmul.f32 %v1052_v29, %v981_v31 }
 0x31d   : > { %v1767_v4 = vpop.f32.mrb[0].mxu1 }
 0x31e   : > { %v1226_v6 = vadd.f32 %v1767_v4, %v1065_v2  ;;  %v1146_v53 = vpop.f32.mrb[1].mxu1  ;;  %v982_v2 = vld [vmem:[#allocation2 + $0x70] sm:$0xff] }
 0x31f   : > { %v1225_v56 = vadd.f32 %v1146_v53, %v1064_v3  ;;  %v1062_v54 = vpop.permute.xlu0 %1061  ;;  %v1057_v3 = vpop.permute.xlu1 %1056 }
 0x320   : > { %1242 = vst.msk [vmem:[#allocation2 + $0x8] sm:$0xff] %vm325_vm0, %v1226_v6  ;;  %v1079_v53 = vmul.f32 %v1062_v54, %v983_v1 }
 0x321   : > { %1241 = vst.msk [vmem:[#allocation2] sm:$0xff] %vm325_vm0, %v1225_v56  ;;  %v1078_v56 = vmul.f32 %v1057_v3, %v982_v2 }
 0x326   : > { %v1770_v43 = vpop.f32.mrb[2].mxu1 }
 0x327   : > { %v1228_v62 = vadd.f32 %v1770_v43, %v1067_v9  ;;  %v1156_v57 = vpop.f32.mrb[3].mxu1 }
 0x328   : > { %v1227_v63 = vadd.f32 %v1156_v57, %v1066_v58  ;;  %v1308_v58 = vld [vmem:[#allocation2] sm:$0xff] }
 0x329   : > { %1244 = vst.msk [vmem:[#allocation2 + $0x18] sm:$0xff] %vm325_vm0, %v1228_v62  ;;  %v1309_v62 = vld [vmem:[#allocation2 + $0x8] sm:$0xff] }
 0x32a   : > { %1243 = vst.msk [vmem:[#allocation2 + $0x10] sm:$0xff] %vm325_vm0, %v1227_v63 }
 0x32e   : > { %v1773_v14 = vpop.f32.mrb[4].mxu1 }
 0x32f   : > { %v1230_v15 = vadd.f32 %v1773_v14, %v1069_v13  ;;  %v1166_v45 = vpop.f32.mrb[5].mxu1 }
 0x330   : > { %v1229_v16 = vadd.f32 %v1166_v45, %v1068_v44  ;;  %v1311_v11 = vld [vmem:[#allocation2 + $0x18] sm:$0xff] }
 0x331   : > { %1246 = vst.msk [vmem:[#allocation2 + $0x28] sm:$0xff] %vm325_vm0, %v1230_v15  ;;  %v1310_v12 = vld [vmem:[#allocation2 + $0x10] sm:$0xff] }
 0x332   : > { %1245 = vst.msk [vmem:[#allocation2 + $0x20] sm:$0xff] %vm325_vm0, %v1229_v16 }
 0x336   : > { %v1776_v21 = vpop.f32.mrb[6].mxu1 }
 0x337   : > { %v1232_v34 = vadd.f32 %v1776_v21, %v1071_v27  ;;  %v1176_v22 = vpop.f32.mrb[7].mxu1 }
 0x338   : > { %v1231_v23 = vadd.f32 %v1176_v22, %v1070_v46  ;;  %v1313_v14 = vld [vmem:[#allocation2 + $0x28] sm:$0xff] }
 0x339   : > { %1248 = vst.msk [vmem:[#allocation2 + $0x38] sm:$0xff] %vm325_vm0, %v1232_v34  ;;  %v1312_v24 = vld [vmem:[#allocation2 + $0x20] sm:$0xff] }
 0x33a   : > { %1247 = vst.msk [vmem:[#allocation2 + $0x30] sm:$0xff] %vm325_vm0, %v1231_v23  ;;  %v1779_v28 = vpop.f32.mrb[8].mxu1 }
 0x33b   : > { %v1234_v41 = vadd.f32 %v1779_v28, %v1073_v39  ;;  %v1186_v32 = vpop.f32.mrb[9].mxu1 }
 0x33c   : > { %v1233_v36 = vadd.f32 %v1186_v32, %v1072_v25 }
 0x33d   : > { %1250 = vst.msk [vmem:[#allocation2 + $0x48] sm:$0xff] %vm325_vm0, %v1234_v41 }
 0x33e   : > { %1249 = vst.msk [vmem:[#allocation2 + $0x40] sm:$0xff] %vm325_vm0, %v1233_v36  ;;  %v1782_v60 = vpop.f32.mrb[10].mxu1 }
 0x33f   : > { %v1236_v52 = vadd.f32 %v1782_v60, %v1075_v48  ;;  %v1196_v50 = vpop.f32.mrb[11].mxu1 }
 0x340   : > { %v1235_v35 = vadd.f32 %v1196_v50, %v1074_v37  ;;  %v1315_v17 = vld [vmem:[#allocation2 + $0x38] sm:$0xff] }
 0x341   : > { %1252 = vst.msk [vmem:[#allocation2 + $0x58] sm:$0xff] %vm325_vm0, %v1236_v52  ;;  %v1314_v46 = vld [vmem:[#allocation2 + $0x30] sm:$0xff] }
 0x342   : > { %1251 = vst.msk [vmem:[#allocation2 + $0x50] sm:$0xff] %vm325_vm0, %v1235_v35  ;;  %v1785_v40 = vpop.f32.mrb[12].mxu1 }
 0x343   : > { %v1238_v4 = vadd.f32 %v1785_v40, %v1077_v0  ;;  %v1206_v5 = vpop.f32.mrb[13].mxu1 }
 0x344   : > { %v1237_v6 = vadd.f32 %v1206_v5, %v1076_v51  ;;  %v1317_v21 = vld [vmem:[#allocation2 + $0x48] sm:$0xff] }
 0x345   : > { %1254 = vst.msk [vmem:[#allocation2 + $0x68] sm:$0xff] %vm325_vm0, %v1238_v4  ;;  %v1316_v34 = vld [vmem:[#allocation2 + $0x40] sm:$0xff] }
 0x346   : > { %1253 = vst.msk [vmem:[#allocation2 + $0x60] sm:$0xff] %vm325_vm0, %v1237_v6  ;;  %v1788_v7 = vpop.f32.mrb[14].mxu1 }
 0x347   : > { %v1240_v38 = vadd.f32 %v1788_v7, %v1079_v53  ;;  %v1216_v8 = vpop.f32.mrb[15].mxu1 }
 0x348   : > { %v1239_v55 = vadd.f32 %v1216_v8, %v1078_v56  ;;  %v1319_v39 = vld [vmem:[#allocation2 + $0x58] sm:$0xff] }
 0x349   : > { %1256 = vst.msk [vmem:[#allocation2 + $0x78] sm:$0xff] %vm325_vm0, %v1240_v38  ;;  %v1318_v28 = vld [vmem:[#allocation2 + $0x50] sm:$0xff] }
 0x34a   : > { %1255 = vst.msk [vmem:[#allocation2 + $0x70] sm:$0xff] %vm325_vm0, %v1239_v55 }
 0x34c   : > { %v1321_v32 = vld [vmem:[#allocation2 + $0x68] sm:$0xff] }
 0x34d   : > { %v1320_v33 = vld [vmem:[#allocation2 + $0x60] sm:$0xff] }
 0x350   : > { %v1323_v31 = vld [vmem:[#allocation2 + $0x78] sm:$0xff] }
 0x351   : > { %v1322_v52 = vld [vmem:[#allocation2 + $0x70] sm:$0xff] }
 0x360   : > { %v1327_v9 = vpop.permute.xlu1 %1326 }
 0x361   : > { %v1404_v43 = vmul.f32 %v1327_v9, %v1308_v58 }
 0x363   : > { %1420 = vst.msk [vmem:[%s2384_s28] sm:$0xff] %vm325_vm0, %v1404_v43 }
 0x364   : > { %v1332_v57 = vpop.permute.xlu0 %1331 }
 0x365   : > { %v1405_v63 = vmul.f32 %v1332_v57, %v1309_v62 }
 0x367   : > { %1421 = vst.msk [vmem:[%s2384_s28 + $0x8] sm:$0xff] %vm325_vm0, %v1405_v63 }
 0x368   : > { %v1342_v42 = vpop.permute.xlu0 %1341 }
 0x369   : > { %v1407_v59 = vmul.f32 %v1342_v42, %v1311_v11 }
 0x36b   : > { %1423 = vst.msk [vmem:[%s2384_s28 + $0x18] sm:$0xff] %vm325_vm0, %v1407_v59 }
 0x36c   : > { %v1337_v13 = vpop.permute.xlu1 %1336 }
 0x36d   : > { %v1406_v44 = vmul.f32 %v1337_v13, %v1310_v12 }
 0x36f   : > { %1422 = vst.msk [vmem:[%s2384_s28 + $0x10] sm:$0xff] %vm325_vm0, %v1406_v44 }
 0x370   : > { %v1352_v15 = vpop.permute.xlu0 %1351 }
 0x371   : > { %v1409_v45 = vmul.f32 %v1352_v15, %v1313_v14 }
 0x373   : > { %1425 = vst.msk [vmem:[%s2384_s28 + $0x28] sm:$0xff] %vm325_vm0, %v1409_v45 }
 0x374   : > { %v1347_v16 = vpop.permute.xlu1 %1346 }
 0x375   : > { %v1408_v49 = vmul.f32 %v1347_v16, %v1312_v24 }
 0x377   : > { %1424 = vst.msk [vmem:[%s2384_s28 + $0x20] sm:$0xff] %vm325_vm0, %v1408_v49 }
 0x378   : > { %v1362_v18 = vpop.permute.xlu0 %1361 }
 0x379   : > { %v1411_v27 = vmul.f32 %v1362_v18, %v1315_v17 }
 0x37b   : > { %1427 = vst.msk [vmem:[%s2384_s28 + $0x38] sm:$0xff] %vm325_vm0, %v1411_v27 }
 0x37c   : > { %v1357_v20 = vpop.permute.xlu1 %1356 }
 0x37d   : > { %v1410_v10 = vmul.f32 %v1357_v20, %v1314_v46  ;;  %v1372_v30 = vpop.permute.xlu0 %1371 }
 0x37e   : > { %v1413_v19 = vmul.f32 %v1372_v30, %v1317_v21 }
 0x37f   : > { %1426 = vst.msk [vmem:[%s2384_s28 + $0x30] sm:$0xff] %vm325_vm0, %v1410_v10 }
 0x380   : > { %1429 = vst.msk [vmem:[%s2384_s28 + $0x48] sm:$0xff] %vm325_vm0, %v1413_v19  ;;  %v1367_v22 = vpop.permute.xlu1 %1366 }
 0x381   : > { %v1412_v23 = vmul.f32 %v1367_v22, %v1316_v34  ;;  %v1382_v25 = vpop.permute.xlu0 %1381 }
 0x382   : > { %v1415_v47 = vmul.f32 %v1382_v25, %v1319_v39 }
 0x383   : > { %1428 = vst.msk [vmem:[%s2384_s28 + $0x40] sm:$0xff] %vm325_vm0, %v1412_v23 }
 0x384   : > { %1431 = vst.msk [vmem:[%s2384_s28 + $0x58] sm:$0xff] %vm325_vm0, %v1415_v47  ;;  %v1377_v26 = vpop.permute.xlu1 %1376 }
 0x385   : > { %v1414_v41 = vmul.f32 %v1377_v26, %v1318_v28  ;;  %v1392_v29 = vpop.permute.xlu0 %1391 }
 0x386   : > { %v1417_v36 = vmul.f32 %v1392_v29, %v1321_v32 }
 0x387   : > { %1430 = vst.msk [vmem:[%s2384_s28 + $0x50] sm:$0xff] %vm325_vm0, %v1414_v41 }
 0x388   : > { %1433 = vst.msk [vmem:[%s2384_s28 + $0x68] sm:$0xff] %vm325_vm0, %v1417_v36  ;;  %v1387_v48 = vpop.permute.xlu1 %1386 }
 0x389   : > { %v1416_v37 = vmul.f32 %v1387_v48, %v1320_v33  ;;  %v1402_v60 = vpop.permute.xlu0 %1401 }
 0x38a   : > { %v1419_v61 = vmul.f32 %v1402_v60, %v1323_v31 }
 0x38b   : > { %1432 = vst.msk [vmem:[%s2384_s28 + $0x60] sm:$0xff] %vm325_vm0, %v1416_v37 }
 0x38c   : > { %1435 = vst.msk [vmem:[%s2384_s28 + $0x78] sm:$0xff] %vm325_vm0, %v1419_v61  ;;  %v1397_v50 = vpop.permute.xlu1 %1396 }
 0x38d   : > { %v1418_v35 = vmul.f32 %v1397_v50, %v1322_v52 }
 0x38f   : > { %1434 = vst.msk [vmem:[%s2384_s28 + $0x70] sm:$0xff] %vm325_vm0, %v1418_v35 }
 0x390 PF: > { %s13_s14 = sadd.s32 1, %s2015_s14   ;;  %s2433_s12 = smov %s2011_s13 }
 0x391   : > { %p10_p5 = scmp.ge.s32.totalorder %s13_s14, 6   ;;  %s2434_s13 = smov %s2436_s15 }
 0x393   :  { %12 = sbr.rel (!%p10_p5) target bundleno = 2 (0x2), region = 76 }

</bundles_post_ra>
